<compile_context>
chip_gen: v7x
topology: tpu7x:2x2x1
jax: 0.10.0
libtpu: 0.0.40
codegen_flags: <defaults>
</compile_context>

<pallas_src>
import numpy as np
import jax
import jax.numpy as jnp
from jax.experimental import pallas as pl
from jax.experimental.pallas import tpu as pltpu

# ---- model config (matches module defaults except small input/action dims) ----
INPUT_DIM = 32
ACTION_DIM = 4
EMBED_DIM = 128          # d_model default
NUM_HEADS = 4
HEAD_DIM = EMBED_DIM // NUM_HEADS
FF_DIM = 2048            # nn.TransformerEncoderLayer default dim_feedforward
SEQ_LEN = 8
BATCH = 2
TOKENS = BATCH * SEQ_LEN
LN_EPS = 1e-5

# ---- packed f32 parameter slab layout (last dim = EMBED_DIM = 128 lanes) ----
OFF_MASK = 0                        # 16 rows, first 16 lanes valid (cross-batch mask)
OFF_POS = OFF_MASK + TOKENS         # 16 rows: tiled positional enc + input-proj bias
OFF_WP = OFF_POS + TOKENS           # 32 rows: input projection weight (f32)
OFF_BQ = OFF_WP + INPUT_DIM         # 64   (Q bias, softmax scale folded)
OFF_BK = OFF_BQ + 1                 # 65
OFF_BV = OFF_BK + 1                 # 66
OFF_BO = OFF_BV + 1                 # 67
OFF_LN1G = OFF_BO + 1               # 68
OFF_LN1B = OFF_LN1G + 1             # 69
OFF_B2 = OFF_LN1B + 1               # 70
OFF_LN2G = OFF_B2 + 1               # 71
OFF_LN2B = OFF_LN2G + 1             # 72
OFF_WFC = OFF_LN2B + 1              # 73, 4 rows: fc_out weight (transposed)
OFF_BFC = OFF_WFC + ACTION_DIM      # 77, first 4 lanes valid
PACKED_ROWS = 80                    # padded to a multiple of 8


def _layer_norm(x, gamma, beta):
    mean = jnp.mean(x, axis=-1, keepdims=True)
    var = jnp.mean((x - mean) ** 2, axis=-1, keepdims=True)
    return (x - mean) * jax.lax.rsqrt(var + LN_EPS) * gamma + beta


def dqn_kernel(x_ref, par_ref, qkvo_ref, b1_ref, w1_hbm, w2_hbm, out_ref,
               w1_vmem, w2_vmem, dma_sems):
    E, H, Dh, T = EMBED_DIM, NUM_HEADS, HEAD_DIM, TOKENS

    # Kick off the ~1 MiB of FFN weight DMA immediately so it streams in while the
    # input-projection / attention / LN1 compute runs.
    cp_w1 = pltpu.make_async_copy(w1_hbm, w1_vmem, dma_sems.at[0])
    cp_w2 = pltpu.make_async_copy(w2_hbm, w2_vmem, dma_sems.at[1])
    cp_w1.start()
    cp_w2.start()

    # ---- input projection + positional encoding (proj bias folded into pos rows) ----
    wp = par_ref[OFF_WP:OFF_WP + INPUT_DIM, :]                       # (32, 128) f32
    h = jnp.dot(x_ref[...], wp, preferred_element_type=jnp.float32)
    h = h + par_ref[OFF_POS:OFF_POS + T, :]                          # (16, 128) f32

    # ---- QKV projection: one lane-dense (16,128)@(128,384) matmul ----
    qkv = jnp.dot(h.astype(jnp.bfloat16), qkvo_ref[:, :3 * E],
                  preferred_element_type=jnp.float32)                # (16, 384) f32
    q = qkv[:, 0:E] + par_ref[OFF_BQ:OFF_BQ + 1, :]                  # scale pre-folded
    k = qkv[:, E:2 * E] + par_ref[OFF_BK:OFF_BK + 1, :]
    v = qkv[:, 2 * E:3 * E] + par_ref[OFF_BV:OFF_BV + 1, :]

    # ---- multi-head attention over all 16 tokens, cross-batch blocks masked ----
    neg_mask = par_ref[OFF_MASK:OFF_MASK + T, :][:, 0:T]             # (16,16): 0 / -1e30
    ctx_parts = []
    for hd in range(H):
        lo = hd * Dh
        qh = q[:, lo:lo + Dh]
        kh = k[:, lo:lo + Dh]
        vh = v[:, lo:lo + Dh]
        s = jax.lax.dot_general(qh, kh, (((1,), (1,)), ((), ())),
                                preferred_element_type=jnp.float32) + neg_mask
        s = s - jnp.max(s, axis=-1, keepdims=True)
        p = jnp.exp(s)
        p = p * pl.reciprocal(jnp.sum(p, axis=-1, keepdims=True), approx=True)
        ctx_parts.append(jnp.dot(p, vh, preferred_element_type=jnp.float32))  # (16,32)
    ctx = jnp.concatenate(ctx_parts, axis=-1)                        # (16,128) heads in lanes

    # ---- attention output projection: single K=128 matmul ----
    attn = jnp.dot(ctx.astype(jnp.bfloat16), qkvo_ref[:, 3 * E:],
                   preferred_element_type=jnp.float32)
    attn = attn + par_ref[OFF_BO:OFF_BO + 1, :]

    # ---- post-norm residual 1 ----
    h1 = _layer_norm(h + attn,
                     par_ref[OFF_LN1G:OFF_LN1G + 1, :],
                     par_ref[OFF_LN1B:OFF_LN1B + 1, :])

    # ---- feed-forward (ReLU); wait for each weight right before its matmul ----
    cp_w1.wait()
    ff = jnp.dot(h1.astype(jnp.bfloat16), w1_vmem[...],
                 preferred_element_type=jnp.float32) + b1_ref[...]
    ff = jnp.maximum(ff, 0.0)
    cp_w2.wait()
    ff = jnp.dot(ff.astype(jnp.bfloat16), w2_vmem[...],
                 preferred_element_type=jnp.float32)
    ff = ff + par_ref[OFF_B2:OFF_B2 + 1, :]

    # ---- post-norm residual 2 ----
    h2 = _layer_norm(h1 + ff,
                     par_ref[OFF_LN2G:OFF_LN2G + 1, :],
                     par_ref[OFF_LN2B:OFF_LN2B + 1, :])

    # ---- mean pool over sequence + output head ----
    pooled = jnp.mean(h2.reshape(BATCH, SEQ_LEN, E), axis=1)         # (B, 128)
    wfc_t = par_ref[OFF_WFC:OFF_WFC + ACTION_DIM, :]                 # (4, 128)
    q_values = jax.lax.dot_general(pooled, wfc_t, (((1,), (1,)), ((), ())),
                                   preferred_element_type=jnp.float32)   # (B, 4)
    bfc = par_ref[OFF_BFC:OFF_BFC + 1, :][:, 0:ACTION_DIM]
    out_ref[...] = q_values + bfc


def prepare_params(params):
    """One-time weight packing (hoisted out of the per-call hot path)."""
    (pos, wp, bp, win, bin_, wo, bo, ln1g, ln1b,
     w1, b1, w2, b2, ln2g, ln2b, wfc, bfc) = params
    E = EMBED_DIM

    # fold the 1/sqrt(head_dim) softmax scale into the Q projection (weights + bias)
    scale = 1.0 / (HEAD_DIM ** 0.5)
    win_s = win.at[:, :E].multiply(scale)
    bin_s = bin_.at[:, :E].multiply(scale)

    # big matmul weights in bf16 (f32 accumulation inside the kernel)
    qkvo = jnp.concatenate([win_s, wo], axis=1).astype(jnp.bfloat16)   # (128, 512)
    w1_bf = w1.astype(jnp.bfloat16)                                    # (128, 2048)
    w2_bf = w2.astype(jnp.bfloat16)                                    # (2048, 128)
    # TODO(synk): weight-only int8 (v5e/v6e) or fp8 (v7x) quantization of w1/w2 would
    # halve the dominant FFN weight DMA; kept bf16 for a single portable kernel.

    # block-diagonal cross-batch additive mask over the flattened token axis
    tok_b = jnp.arange(TOKENS) // SEQ_LEN
    mask16 = jnp.where(tok_b[:, None] == tok_b[None, :], 0.0, -1e30).astype(jnp.float32)
    mask_rows = jnp.zeros((TOKENS, E), jnp.float32).at[:, :TOKENS].set(mask16)

    pos_bp = jnp.tile(pos, (BATCH, 1)) + bp                            # (16, 128)

    packed = jnp.concatenate([
        mask_rows,                                               # OFF_MASK
        pos_bp,                                                  # OFF_POS
        wp,                                                      # OFF_WP
        bin_s[:, :E], bin_s[:, E:2 * E], bin_s[:, 2 * E:],       # bq / bk / bv
        bo, ln1g, ln1b, b2, ln2g, ln2b,
        wfc.T,                                                   # OFF_WFC
        jnp.pad(bfc, ((0, 0), (0, E - ACTION_DIM))),             # OFF_BFC
        jnp.zeros((PACKED_ROWS - (OFF_BFC + 1), E), jnp.float32),
    ], axis=0)
    assert packed.shape == (PACKED_ROWS, E)

    return packed, qkvo, b1, w1_bf, w2_bf


def self_attention_dqn(x, prep):
    packed, qkvo, b1, w1_bf, w2_bf = prep
    x_flat = x.reshape(TOKENS, INPUT_DIM)
    vmem = pl.BlockSpec(memory_space=pltpu.MemorySpace.VMEM)
    hbm = pl.BlockSpec(memory_space=pl.ANY)     # FFN weights stay in HBM, DMA'd manually
    return pl.pallas_call(
        dqn_kernel,
        out_shape=jax.ShapeDtypeStruct((BATCH, ACTION_DIM), jnp.float32),
        in_specs=[vmem, vmem, vmem, vmem, hbm, hbm],
        out_specs=vmem,
        scratch_shapes=[
            pltpu.VMEM((EMBED_DIM, FF_DIM), jnp.bfloat16),   # w1 landing buffer
            pltpu.VMEM((FF_DIM, EMBED_DIM), jnp.bfloat16),   # w2 landing buffer
            pltpu.SemaphoreType.DMA((2,)),
        ],
    )(x_flat, packed, qkvo, b1, w1_bf, w2_bf)


# ---------------- parameter init (deterministic, PyTorch-ish ranges) ------------
def init_params(key):
    ks = jax.random.split(key, 12)

    def lin(kw, kb, fan_in, fan_out):
        bound = 1.0 / (fan_in ** 0.5)
        w = jax.random.uniform(kw, (fan_in, fan_out), jnp.float32, -bound, bound)
        b = jax.random.uniform(kb, (1, fan_out), jnp.float32, -bound, bound)
        return w, b

    pos = jax.random.normal(ks[0], (SEQ_LEN, EMBED_DIM), jnp.float32)
    wp, bp = lin(ks[1], ks[2], INPUT_DIM, EMBED_DIM)
    win, bin_ = lin(ks[3], ks[4], EMBED_DIM, 3 * EMBED_DIM)
    wo, bo = lin(ks[5], ks[6], EMBED_DIM, EMBED_DIM)
    w1, b1 = lin(ks[7], ks[8], EMBED_DIM, FF_DIM)
    w2, b2 = lin(ks[9], ks[10], FF_DIM, EMBED_DIM)
    wfc, bfc = lin(ks[11], ks[0], EMBED_DIM, ACTION_DIM)
    ln1g = jnp.ones((1, EMBED_DIM), jnp.float32)
    ln1b = jnp.zeros((1, EMBED_DIM), jnp.float32)
    ln2g = jnp.ones((1, EMBED_DIM), jnp.float32)
    ln2b = jnp.zeros((1, EMBED_DIM), jnp.float32)
    return (pos, wp, bp, win, bin_, wo, bo, ln1g, ln1b,
            w1, b1, w2, b2, ln2g, ln2b, wfc, bfc)


# ---------------- pure-JAX f32 reference (PyTorch semantics, for verification) ---
def reference(x, params):
    (pos, wp, bp, win, bin_, wo, bo, ln1g, ln1b,
     w1, b1, w2, b2, ln2g, ln2b, wfc, bfc) = params
    B, S, _ = x.shape
    h = x @ wp + bp + pos                                           # (B,S,E)
    qkv = h @ win + bin_
    q, k, v = jnp.split(qkv, 3, axis=-1)

    def heads(t):
        return t.reshape(B, S, NUM_HEADS, HEAD_DIM).transpose(0, 2, 1, 3)

    qh, kh, vh = heads(q), heads(k), heads(v)
    scores = jnp.einsum('bhqd,bhkd->bhqk', qh, kh) / (HEAD_DIM ** 0.5)
    p = jax.nn.softmax(scores, axis=-1)
    o = jnp.einsum('bhqk,bhkd->bhqd', p, vh).transpose(0, 2, 1, 3).reshape(B, S, EMBED_DIM)
    attn = o @ wo + bo
    h = _layer_norm(h + attn, ln1g, ln1b)
    ff = jax.nn.relu(h @ w1 + b1) @ w2 + b2
    h = _layer_norm(h + ff, ln2g, ln2b)
    pooled = h.mean(axis=1)
    return pooled @ wfc + bfc


if __name__ == "__main__":
    key = jax.random.PRNGKey(0)
    kx, kp = jax.random.split(key)
    params = init_params(kp)
    x = jax.random.normal(kx, (BATCH, SEQ_LEN, INPUT_DIM), jnp.float32)

    # weight packing done ONCE, outside the per-step hot path
    prep = prepare_params(params)

    fwd = jax.jit(self_attention_dqn)
    out = jax.block_until_ready(fwd(x, prep))

    ref = reference(x, params)
    # tolerance loosened vs. pure-f32 because the big matmuls use bf16 weights
    # and the softmax uses the approx EUP reciprocal (expected error ~1e-2).
    np.testing.assert_allclose(np.asarray(out), np.asarray(ref), rtol=3e-2, atol=3e-2)
    assert out.shape == (BATCH, ACTION_DIM)
    print("KERNEL_OK")
</pallas_src>

<mosaic_0001>
module attributes {stable_mosaic.version = 11 : i64} {
  func.func @dqn_kernel(%arg0: memref<16x32xf32, #tpu.memory_space<vmem>>, %arg1: memref<80x128xf32, #tpu.memory_space<vmem>>, %arg2: memref<128x512xbf16, #tpu.memory_space<vmem>>, %arg3: memref<1x2048xf32, #tpu.memory_space<vmem>>, %arg4: memref<128x2048xbf16, #tpu.memory_space<any>>, %arg5: memref<2048x128xbf16, #tpu.memory_space<any>>, %arg6: memref<2x4xf32, #tpu.memory_space<vmem>>, %arg7: memref<128x2048xbf16, #tpu.memory_space<vmem>>, %arg8: memref<2048x128xbf16, #tpu.memory_space<vmem>>, %arg9: memref<2x!tpu.dma_semaphore, #tpu.memory_space<semaphore_mem>>) attributes {dimension_semantics = [], scalar_prefetch = 0 : i64, scratch_operands = 3 : i64, tpu.core_type = #tpu.core_type<tc>} {
    %c0_i32 = arith.constant 0 : i32
    %0 = tpu.memref_slice %arg9[%c0_i32] : memref<2x!tpu.dma_semaphore, #tpu.memory_space<semaphore_mem>> -> memref<1x!tpu.dma_semaphore, #tpu.memory_space<semaphore_mem>>
    %1 = tpu.memref_squeeze %0 : memref<1x!tpu.dma_semaphore, #tpu.memory_space<semaphore_mem>> -> memref<!tpu.dma_semaphore, #tpu.memory_space<semaphore_mem>>
    tpu.enqueue_dma source(%arg4 : memref<128x2048xbf16, #tpu.memory_space<any>>) target(%arg7 : memref<128x2048xbf16, #tpu.memory_space<vmem>>) target_semaphore(%1 : memref<!tpu.dma_semaphore, #tpu.memory_space<semaphore_mem>>)
    %c1_i32 = arith.constant 1 : i32
    %2 = tpu.memref_slice %arg9[%c1_i32] : memref<2x!tpu.dma_semaphore, #tpu.memory_space<semaphore_mem>> -> memref<1x!tpu.dma_semaphore, #tpu.memory_space<semaphore_mem>>
    %3 = tpu.memref_squeeze %2 : memref<1x!tpu.dma_semaphore, #tpu.memory_space<semaphore_mem>> -> memref<!tpu.dma_semaphore, #tpu.memory_space<semaphore_mem>>
    tpu.enqueue_dma source(%arg5 : memref<2048x128xbf16, #tpu.memory_space<any>>) target(%arg8 : memref<2048x128xbf16, #tpu.memory_space<vmem>>) target_semaphore(%3 : memref<!tpu.dma_semaphore, #tpu.memory_space<semaphore_mem>>)
    %c32 = arith.constant 32 : index
    %c0 = arith.constant 0 : index
    %4 = vector.load %arg1[%c32, %c0] : memref<80x128xf32, #tpu.memory_space<vmem>>, vector<32x128xf32>
    %c0_0 = arith.constant 0 : index
    %c0_1 = arith.constant 0 : index
    %5 = vector.load %arg0[%c0_0, %c0_1] : memref<16x32xf32, #tpu.memory_space<vmem>>, vector<16x32xf32>
    %cst = arith.constant dense<0.000000e+00> : vector<16x128xf32>
    %6 = tpu.matmul %5, %4, %cst {dimension_numbers = #tpu.dot_dimension_numbers<[1], [0], [0], [1], [0, 0, 1, 1], [], []>} : vector<16x32xf32>, vector<32x128xf32>, vector<16x128xf32> -> vector<16x128xf32>
    %c16 = arith.constant 16 : index
    %c0_2 = arith.constant 0 : index
    %7 = vector.load %arg1[%c16, %c0_2] : memref<80x128xf32, #tpu.memory_space<vmem>>, vector<16x128xf32>
    %8 = arith.addf %6, %7 : vector<16x128xf32>
    %9 = arith.truncf %8 : vector<16x128xf32> to vector<16x128xbf16>
    %c0_3 = arith.constant 0 : index
    %c0_4 = arith.constant 0 : index
    %10 = vector.load %arg2[%c0_3, %c0_4] : memref<128x512xbf16, #tpu.memory_space<vmem>>, vector<128x384xbf16>
    %cst_5 = arith.constant dense<0.000000e+00> : vector<16x384xf32>
    %11 = tpu.matmul %9, %10, %cst_5 {dimension_numbers = #tpu.dot_dimension_numbers<[1], [0], [0], [1], [0, 0, 1, 1], [], []>} : vector<16x128xbf16>, vector<128x384xbf16>, vector<16x384xf32> -> vector<16x384xf32>
    %12 = vector.extract_strided_slice %11 {offsets = [0, 0], sizes = [16, 128], strides = [1, 1]} : vector<16x384xf32> to vector<16x128xf32>
    %c64 = arith.constant 64 : index
    %c0_6 = arith.constant 0 : index
    %13 = vector.load %arg1[%c64, %c0_6] : memref<80x128xf32, #tpu.memory_space<vmem>>, vector<1x128xf32>
    %14 = vector.broadcast %13 : vector<1x128xf32> to vector<16x128xf32>
    %15 = arith.addf %12, %14 : vector<16x128xf32>
    %16 = vector.extract_strided_slice %11 {offsets = [0, 128], sizes = [16, 128], strides = [1, 1]} : vector<16x384xf32> to vector<16x128xf32>
    %c65 = arith.constant 65 : index
    %c0_7 = arith.constant 0 : index
    %17 = vector.load %arg1[%c65, %c0_7] : memref<80x128xf32, #tpu.memory_space<vmem>>, vector<1x128xf32>
    %18 = vector.broadcast %17 : vector<1x128xf32> to vector<16x128xf32>
    %19 = arith.addf %16, %18 : vector<16x128xf32>
    %20 = vector.extract_strided_slice %11 {offsets = [0, 256], sizes = [16, 128], strides = [1, 1]} : vector<16x384xf32> to vector<16x128xf32>
    %c66 = arith.constant 66 : index
    %c0_8 = arith.constant 0 : index
    %21 = vector.load %arg1[%c66, %c0_8] : memref<80x128xf32, #tpu.memory_space<vmem>>, vector<1x128xf32>
    %22 = vector.broadcast %21 : vector<1x128xf32> to vector<16x128xf32>
    %23 = arith.addf %20, %22 : vector<16x128xf32>
    %c0_9 = arith.constant 0 : index
    %c0_10 = arith.constant 0 : index
    %24 = vector.load %arg1[%c0_9, %c0_10] : memref<80x128xf32, #tpu.memory_space<vmem>>, vector<16x128xf32>
    %25 = vector.extract_strided_slice %24 {offsets = [0, 0], sizes = [16, 16], strides = [1, 1]} : vector<16x128xf32> to vector<16x16xf32>
    %26 = vector.extract_strided_slice %15 {offsets = [0, 0], sizes = [16, 32], strides = [1, 1]} : vector<16x128xf32> to vector<16x32xf32>
    %27 = vector.extract_strided_slice %19 {offsets = [0, 0], sizes = [16, 32], strides = [1, 1]} : vector<16x128xf32> to vector<16x32xf32>
    %28 = vector.extract_strided_slice %23 {offsets = [0, 0], sizes = [16, 32], strides = [1, 1]} : vector<16x128xf32> to vector<16x32xf32>
    %cst_11 = arith.constant dense<0.000000e+00> : vector<16x16xf32>
    %29 = tpu.matmul %26, %27, %cst_11 {dimension_numbers = #tpu.dot_dimension_numbers<[1], [1], [0], [0], [0, 0, 1, 0], [], []>} : vector<16x32xf32>, vector<16x32xf32>, vector<16x16xf32> -> vector<16x16xf32>
    %30 = arith.addf %29, %25 : vector<16x16xf32>
    %cst_12 = arith.constant dense<0xFF800000> : vector<16xf32>
    %31 = vector.multi_reduction <maximumf>, %30, %cst_12 [1] : vector<16x16xf32> to vector<16xf32>
    %32 = vector.shape_cast %31 : vector<16xf32> to vector<16x1xf32>
    %33 = vector.broadcast %32 : vector<16x1xf32> to vector<16x16xf32>
    %34 = arith.subf %30, %33 : vector<16x16xf32>
    %35 = math.exp %34 : vector<16x16xf32>
    %cst_13 = arith.constant dense<0.000000e+00> : vector<16xf32>
    %36 = vector.multi_reduction <add>, %35, %cst_13 [1] : vector<16x16xf32> to vector<16xf32>
    %37 = vector.shape_cast %36 : vector<16xf32> to vector<16x1xf32>
    %38 = tpu.reciprocal %37 {approx = true} : vector<16x1xf32> -> vector<16x1xf32>
    %39 = vector.broadcast %38 : vector<16x1xf32> to vector<16x16xf32>
    %40 = arith.mulf %35, %39 : vector<16x16xf32>
    %cst_14 = arith.constant dense<0.000000e+00> : vector<16x32xf32>
    %41 = tpu.matmul %40, %28, %cst_14 {dimension_numbers = #tpu.dot_dimension_numbers<[1], [0], [0], [1], [0, 0, 1, 1], [], []>} : vector<16x16xf32>, vector<16x32xf32>, vector<16x32xf32> -> vector<16x32xf32>
    %42 = vector.extract_strided_slice %15 {offsets = [0, 32], sizes = [16, 32], strides = [1, 1]} : vector<16x128xf32> to vector<16x32xf32>
    %43 = vector.extract_strided_slice %19 {offsets = [0, 32], sizes = [16, 32], strides = [1, 1]} : vector<16x128xf32> to vector<16x32xf32>
    %44 = vector.extract_strided_slice %23 {offsets = [0, 32], sizes = [16, 32], strides = [1, 1]} : vector<16x128xf32> to vector<16x32xf32>
    %cst_15 = arith.constant dense<0.000000e+00> : vector<16x16xf32>
    %45 = tpu.matmul %42, %43, %cst_15 {dimension_numbers = #tpu.dot_dimension_numbers<[1], [1], [0], [0], [0, 0, 1, 0], [], []>} : vector<16x32xf32>, vector<16x32xf32>, vector<16x16xf32> -> vector<16x16xf32>
    %46 = arith.addf %45, %25 : vector<16x16xf32>
    %cst_16 = arith.constant dense<0xFF800000> : vector<16xf32>
    %47 = vector.multi_reduction <maximumf>, %46, %cst_16 [1] : vector<16x16xf32> to vector<16xf32>
    %48 = vector.shape_cast %47 : vector<16xf32> to vector<16x1xf32>
    %49 = vector.broadcast %48 : vector<16x1xf32> to vector<16x16xf32>
    %50 = arith.subf %46, %49 : vector<16x16xf32>
    %51 = math.exp %50 : vector<16x16xf32>
    %cst_17 = arith.constant dense<0.000000e+00> : vector<16xf32>
    %52 = vector.multi_reduction <add>, %51, %cst_17 [1] : vector<16x16xf32> to vector<16xf32>
    %53 = vector.shape_cast %52 : vector<16xf32> to vector<16x1xf32>
    %54 = tpu.reciprocal %53 {approx = true} : vector<16x1xf32> -> vector<16x1xf32>
    %55 = vector.broadcast %54 : vector<16x1xf32> to vector<16x16xf32>
    %56 = arith.mulf %51, %55 : vector<16x16xf32>
    %cst_18 = arith.constant dense<0.000000e+00> : vector<16x32xf32>
    %57 = tpu.matmul %56, %44, %cst_18 {dimension_numbers = #tpu.dot_dimension_numbers<[1], [0], [0], [1], [0, 0, 1, 1], [], []>} : vector<16x16xf32>, vector<16x32xf32>, vector<16x32xf32> -> vector<16x32xf32>
    %58 = vector.extract_strided_slice %15 {offsets = [0, 64], sizes = [16, 32], strides = [1, 1]} : vector<16x128xf32> to vector<16x32xf32>
    %59 = vector.extract_strided_slice %19 {offsets = [0, 64], sizes = [16, 32], strides = [1, 1]} : vector<16x128xf32> to vector<16x32xf32>
    %60 = vector.extract_strided_slice %23 {offsets = [0, 64], sizes = [16, 32], strides = [1, 1]} : vector<16x128xf32> to vector<16x32xf32>
    %cst_19 = arith.constant dense<0.000000e+00> : vector<16x16xf32>
    %61 = tpu.matmul %58, %59, %cst_19 {dimension_numbers = #tpu.dot_dimension_numbers<[1], [1], [0], [0], [0, 0, 1, 0], [], []>} : vector<16x32xf32>, vector<16x32xf32>, vector<16x16xf32> -> vector<16x16xf32>
    %62 = arith.addf %61, %25 : vector<16x16xf32>
    %cst_20 = arith.constant dense<0xFF800000> : vector<16xf32>
    %63 = vector.multi_reduction <maximumf>, %62, %cst_20 [1] : vector<16x16xf32> to vector<16xf32>
    %64 = vector.shape_cast %63 : vector<16xf32> to vector<16x1xf32>
    %65 = vector.broadcast %64 : vector<16x1xf32> to vector<16x16xf32>
    %66 = arith.subf %62, %65 : vector<16x16xf32>
    %67 = math.exp %66 : vector<16x16xf32>
    %cst_21 = arith.constant dense<0.000000e+00> : vector<16xf32>
    %68 = vector.multi_reduction <add>, %67, %cst_21 [1] : vector<16x16xf32> to vector<16xf32>
    %69 = vector.shape_cast %68 : vector<16xf32> to vector<16x1xf32>
    %70 = tpu.reciprocal %69 {approx = true} : vector<16x1xf32> -> vector<16x1xf32>
    %71 = vector.broadcast %70 : vector<16x1xf32> to vector<16x16xf32>
    %72 = arith.mulf %67, %71 : vector<16x16xf32>
    %cst_22 = arith.constant dense<0.000000e+00> : vector<16x32xf32>
    %73 = tpu.matmul %72, %60, %cst_22 {dimension_numbers = #tpu.dot_dimension_numbers<[1], [0], [0], [1], [0, 0, 1, 1], [], []>} : vector<16x16xf32>, vector<16x32xf32>, vector<16x32xf32> -> vector<16x32xf32>
    %74 = vector.extract_strided_slice %15 {offsets = [0, 96], sizes = [16, 32], strides = [1, 1]} : vector<16x128xf32> to vector<16x32xf32>
    %75 = vector.extract_strided_slice %19 {offsets = [0, 96], sizes = [16, 32], strides = [1, 1]} : vector<16x128xf32> to vector<16x32xf32>
    %76 = vector.extract_strided_slice %23 {offsets = [0, 96], sizes = [16, 32], strides = [1, 1]} : vector<16x128xf32> to vector<16x32xf32>
    %cst_23 = arith.constant dense<0.000000e+00> : vector<16x16xf32>
    %77 = tpu.matmul %74, %75, %cst_23 {dimension_numbers = #tpu.dot_dimension_numbers<[1], [1], [0], [0], [0, 0, 1, 0], [], []>} : vector<16x32xf32>, vector<16x32xf32>, vector<16x16xf32> -> vector<16x16xf32>
    %78 = arith.addf %77, %25 : vector<16x16xf32>
    %cst_24 = arith.constant dense<0xFF800000> : vector<16xf32>
    %79 = vector.multi_reduction <maximumf>, %78, %cst_24 [1] : vector<16x16xf32> to vector<16xf32>
    %80 = vector.shape_cast %79 : vector<16xf32> to vector<16x1xf32>
    %81 = vector.broadcast %80 : vector<16x1xf32> to vector<16x16xf32>
    %82 = arith.subf %78, %81 : vector<16x16xf32>
    %83 = math.exp %82 : vector<16x16xf32>
    %cst_25 = arith.constant dense<0.000000e+00> : vector<16xf32>
    %84 = vector.multi_reduction <add>, %83, %cst_25 [1] : vector<16x16xf32> to vector<16xf32>
    %85 = vector.shape_cast %84 : vector<16xf32> to vector<16x1xf32>
    %86 = tpu.reciprocal %85 {approx = true} : vector<16x1xf32> -> vector<16x1xf32>
    %87 = vector.broadcast %86 : vector<16x1xf32> to vector<16x16xf32>
    %88 = arith.mulf %83, %87 : vector<16x16xf32>
    %cst_26 = arith.constant dense<0.000000e+00> : vector<16x32xf32>
    %89 = tpu.matmul %88, %76, %cst_26 {dimension_numbers = #tpu.dot_dimension_numbers<[1], [0], [0], [1], [0, 0, 1, 1], [], []>} : vector<16x16xf32>, vector<16x32xf32>, vector<16x32xf32> -> vector<16x32xf32>
    %90 = tpu.concatenate %41, %57, %73, %89 in 1 : vector<16x32xf32>, vector<16x32xf32>, vector<16x32xf32>, vector<16x32xf32> -> vector<16x128xf32>
    %91 = arith.truncf %90 : vector<16x128xf32> to vector<16x128xbf16>
    %c0_27 = arith.constant 0 : index
    %c384 = arith.constant 384 : index
    %92 = vector.load %arg2[%c0_27, %c384] : memref<128x512xbf16, #tpu.memory_space<vmem>>, vector<128x128xbf16>
    %cst_28 = arith.constant dense<0.000000e+00> : vector<16x128xf32>
    %93 = tpu.matmul %91, %92, %cst_28 {dimension_numbers = #tpu.dot_dimension_numbers<[1], [0], [0], [1], [0, 0, 1, 1], [], []>} : vector<16x128xbf16>, vector<128x128xbf16>, vector<16x128xf32> -> vector<16x128xf32>
    %c67 = arith.constant 67 : index
    %c0_29 = arith.constant 0 : index
    %94 = vector.load %arg1[%c67, %c0_29] : memref<80x128xf32, #tpu.memory_space<vmem>>, vector<1x128xf32>
    %95 = vector.broadcast %94 : vector<1x128xf32> to vector<16x128xf32>
    %96 = arith.addf %93, %95 : vector<16x128xf32>
    %97 = arith.addf %8, %96 : vector<16x128xf32>
    %c68 = arith.constant 68 : index
    %c0_30 = arith.constant 0 : index
    %98 = vector.load %arg1[%c68, %c0_30] : memref<80x128xf32, #tpu.memory_space<vmem>>, vector<1x128xf32>
    %c69 = arith.constant 69 : index
    %c0_31 = arith.constant 0 : index
    %99 = vector.load %arg1[%c69, %c0_31] : memref<80x128xf32, #tpu.memory_space<vmem>>, vector<1x128xf32>
    %cst_32 = arith.constant dense<0.000000e+00> : vector<16xf32>
    %100 = vector.multi_reduction <add>, %97, %cst_32 [1] : vector<16x128xf32> to vector<16xf32>
    %101 = vector.shape_cast %100 : vector<16xf32> to vector<16x1xf32>
    %cst_33 = arith.constant 1.280000e+02 : f32
    %102 = vector.broadcast %cst_33 : f32 to vector<16x1xf32>
    %103 = arith.divf %101, %102 : vector<16x1xf32>
    %104 = vector.broadcast %103 : vector<16x1xf32> to vector<16x128xf32>
    %105 = arith.subf %97, %104 : vector<16x128xf32>
    %106 = arith.mulf %105, %105 : vector<16x128xf32>
    %cst_34 = arith.constant dense<0.000000e+00> : vector<16xf32>
    %107 = vector.multi_reduction <add>, %106, %cst_34 [1] : vector<16x128xf32> to vector<16xf32>
    %108 = vector.shape_cast %107 : vector<16xf32> to vector<16x1xf32>
    %cst_35 = arith.constant 1.280000e+02 : f32
    %109 = vector.broadcast %cst_35 : f32 to vector<16x1xf32>
    %110 = arith.divf %108, %109 : vector<16x1xf32>
    %111 = vector.broadcast %103 : vector<16x1xf32> to vector<16x128xf32>
    %112 = arith.subf %97, %111 : vector<16x128xf32>
    %cst_36 = arith.constant 9.99999974E-6 : f32
    %113 = vector.broadcast %cst_36 : f32 to vector<16x1xf32>
    %114 = arith.addf %110, %113 : vector<16x1xf32>
    %115 = math.rsqrt %114 : vector<16x1xf32>
    %116 = vector.broadcast %115 : vector<16x1xf32> to vector<16x128xf32>
    %117 = arith.mulf %112, %116 : vector<16x128xf32>
    %118 = vector.broadcast %98 : vector<1x128xf32> to vector<16x128xf32>
    %119 = arith.mulf %117, %118 : vector<16x128xf32>
    %120 = vector.broadcast %99 : vector<1x128xf32> to vector<16x128xf32>
    %121 = arith.addf %119, %120 : vector<16x128xf32>
    %c0_i32_37 = arith.constant 0 : i32
    %122 = tpu.memref_slice %arg9[%c0_i32_37] : memref<2x!tpu.dma_semaphore, #tpu.memory_space<semaphore_mem>> -> memref<1x!tpu.dma_semaphore, #tpu.memory_space<semaphore_mem>>
    %123 = tpu.memref_squeeze %122 : memref<1x!tpu.dma_semaphore, #tpu.memory_space<semaphore_mem>> -> memref<!tpu.dma_semaphore, #tpu.memory_space<semaphore_mem>>
    tpu.wait_dma2 semaphore(%123 : memref<!tpu.dma_semaphore, #tpu.memory_space<semaphore_mem>>) src(%arg4 : memref<128x2048xbf16, #tpu.memory_space<any>>) dst(%arg7 : memref<128x2048xbf16, #tpu.memory_space<vmem>>)
    %124 = arith.truncf %121 : vector<16x128xf32> to vector<16x128xbf16>
    %c0_38 = arith.constant 0 : index
    %c0_39 = arith.constant 0 : index
    %125 = vector.load %arg7[%c0_38, %c0_39] : memref<128x2048xbf16, #tpu.memory_space<vmem>>, vector<128x2048xbf16>
    %cst_40 = arith.constant dense<0.000000e+00> : vector<16x2048xf32>
    %126 = tpu.matmul %124, %125, %cst_40 {dimension_numbers = #tpu.dot_dimension_numbers<[1], [0], [0], [1], [0, 0, 1, 1], [], []>} : vector<16x128xbf16>, vector<128x2048xbf16>, vector<16x2048xf32> -> vector<16x2048xf32>
    %c0_41 = arith.constant 0 : index
    %c0_42 = arith.constant 0 : index
    %127 = vector.load %arg3[%c0_41, %c0_42] : memref<1x2048xf32, #tpu.memory_space<vmem>>, vector<1x2048xf32>
    %128 = vector.broadcast %127 : vector<1x2048xf32> to vector<16x2048xf32>
    %129 = arith.addf %126, %128 : vector<16x2048xf32>
    %cst_43 = arith.constant 0.000000e+00 : f32
    %130 = vector.broadcast %cst_43 : f32 to vector<16x2048xf32>
    %131 = arith.maximumf %129, %130 : vector<16x2048xf32>
    %c1_i32_44 = arith.constant 1 : i32
    %132 = tpu.memref_slice %arg9[%c1_i32_44] : memref<2x!tpu.dma_semaphore, #tpu.memory_space<semaphore_mem>> -> memref<1x!tpu.dma_semaphore, #tpu.memory_space<semaphore_mem>>
    %133 = tpu.memref_squeeze %132 : memref<1x!tpu.dma_semaphore, #tpu.memory_space<semaphore_mem>> -> memref<!tpu.dma_semaphore, #tpu.memory_space<semaphore_mem>>
    tpu.wait_dma2 semaphore(%133 : memref<!tpu.dma_semaphore, #tpu.memory_space<semaphore_mem>>) src(%arg5 : memref<2048x128xbf16, #tpu.memory_space<any>>) dst(%arg8 : memref<2048x128xbf16, #tpu.memory_space<vmem>>)
    %134 = arith.truncf %131 : vector<16x2048xf32> to vector<16x2048xbf16>
    %c0_45 = arith.constant 0 : index
    %c0_46 = arith.constant 0 : index
    %135 = vector.load %arg8[%c0_45, %c0_46] : memref<2048x128xbf16, #tpu.memory_space<vmem>>, vector<2048x128xbf16>
    %cst_47 = arith.constant dense<0.000000e+00> : vector<16x128xf32>
    %136 = tpu.matmul %134, %135, %cst_47 {dimension_numbers = #tpu.dot_dimension_numbers<[1], [0], [0], [1], [0, 0, 1, 1], [], []>} : vector<16x2048xbf16>, vector<2048x128xbf16>, vector<16x128xf32> -> vector<16x128xf32>
    %c70 = arith.constant 70 : index
    %c0_48 = arith.constant 0 : index
    %137 = vector.load %arg1[%c70, %c0_48] : memref<80x128xf32, #tpu.memory_space<vmem>>, vector<1x128xf32>
    %138 = vector.broadcast %137 : vector<1x128xf32> to vector<16x128xf32>
    %139 = arith.addf %136, %138 : vector<16x128xf32>
    %140 = arith.addf %121, %139 : vector<16x128xf32>
    %c71 = arith.constant 71 : index
    %c0_49 = arith.constant 0 : index
    %141 = vector.load %arg1[%c71, %c0_49] : memref<80x128xf32, #tpu.memory_space<vmem>>, vector<1x128xf32>
    %c72 = arith.constant 72 : index
    %c0_50 = arith.constant 0 : index
    %142 = vector.load %arg1[%c72, %c0_50] : memref<80x128xf32, #tpu.memory_space<vmem>>, vector<1x128xf32>
    %cst_51 = arith.constant dense<0.000000e+00> : vector<16xf32>
    %143 = vector.multi_reduction <add>, %140, %cst_51 [1] : vector<16x128xf32> to vector<16xf32>
    %144 = vector.shape_cast %143 : vector<16xf32> to vector<16x1xf32>
    %cst_52 = arith.constant 1.280000e+02 : f32
    %145 = vector.broadcast %cst_52 : f32 to vector<16x1xf32>
    %146 = arith.divf %144, %145 : vector<16x1xf32>
    %147 = vector.broadcast %146 : vector<16x1xf32> to vector<16x128xf32>
    %148 = arith.subf %140, %147 : vector<16x128xf32>
    %149 = arith.mulf %148, %148 : vector<16x128xf32>
    %cst_53 = arith.constant dense<0.000000e+00> : vector<16xf32>
    %150 = vector.multi_reduction <add>, %149, %cst_53 [1] : vector<16x128xf32> to vector<16xf32>
    %151 = vector.shape_cast %150 : vector<16xf32> to vector<16x1xf32>
    %cst_54 = arith.constant 1.280000e+02 : f32
    %152 = vector.broadcast %cst_54 : f32 to vector<16x1xf32>
    %153 = arith.divf %151, %152 : vector<16x1xf32>
    %154 = vector.broadcast %146 : vector<16x1xf32> to vector<16x128xf32>
    %155 = arith.subf %140, %154 : vector<16x128xf32>
    %cst_55 = arith.constant 9.99999974E-6 : f32
    %156 = vector.broadcast %cst_55 : f32 to vector<16x1xf32>
    %157 = arith.addf %153, %156 : vector<16x1xf32>
    %158 = math.rsqrt %157 : vector<16x1xf32>
    %159 = vector.broadcast %158 : vector<16x1xf32> to vector<16x128xf32>
    %160 = arith.mulf %155, %159 : vector<16x128xf32>
    %161 = vector.broadcast %141 : vector<1x128xf32> to vector<16x128xf32>
    %162 = arith.mulf %160, %161 : vector<16x128xf32>
    %163 = vector.broadcast %142 : vector<1x128xf32> to vector<16x128xf32>
    %164 = arith.addf %162, %163 : vector<16x128xf32>
    %165 = vector.shape_cast %164 : vector<16x128xf32> to vector<2x8x128xf32>
    %cst_56 = arith.constant dense<0.000000e+00> : vector<2x128xf32>
    %166 = vector.multi_reduction <add>, %165, %cst_56 [1] : vector<2x8x128xf32> to vector<2x128xf32>
    %cst_57 = arith.constant 8.000000e+00 : f32
    %167 = vector.broadcast %cst_57 : f32 to vector<2x128xf32>
    %168 = arith.divf %166, %167 : vector<2x128xf32>
    %c73 = arith.constant 73 : index
    %c0_58 = arith.constant 0 : index
    %169 = vector.load %arg1[%c73, %c0_58] : memref<80x128xf32, #tpu.memory_space<vmem>>, vector<4x128xf32>
    %cst_59 = arith.constant dense<0.000000e+00> : vector<2x4xf32>
    %170 = tpu.matmul %168, %169, %cst_59 {dimension_numbers = #tpu.dot_dimension_numbers<[1], [1], [0], [0], [0, 0, 1, 0], [], []>} : vector<2x128xf32>, vector<4x128xf32>, vector<2x4xf32> -> vector<2x4xf32>
    %c77 = arith.constant 77 : index
    %c0_60 = arith.constant 0 : index
    %171 = vector.load %arg1[%c77, %c0_60] : memref<80x128xf32, #tpu.memory_space<vmem>>, vector<1x128xf32>
    %172 = vector.extract_strided_slice %171 {offsets = [0, 0], sizes = [1, 4], strides = [1, 1]} : vector<1x128xf32> to vector<1x4xf32>
    %173 = vector.broadcast %172 : vector<1x4xf32> to vector<2x4xf32>
    %174 = arith.addf %170, %173 : vector<2x4xf32>
    %c0_61 = arith.constant 0 : index
    %c0_62 = arith.constant 0 : index
    %175 = vector.load %arg6[%c0_61, %c0_62] : memref<2x4xf32, #tpu.memory_space<vmem>>, vector<2x4xf32>
    tpu.vector_store %arg6[%c0_61, %c0_62], %174 {strides = array<i32>} : memref<2x4xf32, #tpu.memory_space<vmem>>, vector<2x4xf32>,
    return
  }
}

</mosaic_0001>

<bundles_post_ra>
// kernel: self_attention_dqn.1
= control target key start
LH: loop header
LB: loop body
LE: loop exit
PB: predicated region body
PF: predicated region fallthrough
CT: control target
= control target key end

     0   :  { %11 = vsyncpa [#allocation6], 0  ;;  %s3958_s0 = inlined_call_operand.hbm [shape: f32[16,32], index: 0, kind: input, shape index: {}]   ;;  %s3959_s1 = inlined_call_operand.hbm [shape: f32[80,128], index: 1, kind: input, shape index: {}]   ;;  %s3960_s2 = inlined_call_operand.hbm [shape: bf16[128,512], index: 2, kind: input, shape index: {}]   ;;  %s3961_s3 = inlined_call_operand.hbm [shape: f32[1,2048], index: 3, kind: input, shape index: {}]   ;;  %s3962_s4 = inlined_call_operand.hbm [shape: bf16[128,2048], index: 4, kind: input, shape index: {}]   ;;  %s3963_s5 = inlined_call_operand.hbm [shape: bf16[2048,128], index: 5, kind: input, shape index: {}]   ;;  %s3964_s6 = inlined_call_operand.hbm [shape: f32[2,4], index: 6, kind: output, shape index: {}]  }
   0x1   :  { %12 = vsyncpa [#allocation9], 0 }
   0x2   :  { %13 = vsyncpa [#allocation12], 0 }
   0x3   :  { %14 = vsyncpa [#allocation7], 0  ;;  %s3452_s21 = smov [#allocation8]   ;;  %s3453_s23 = smov [#allocation5]  }
   0x4   :  { %s32_s22 = sshll.u32 %s3452_s21, 4  ;;  %s20_s24 = sshll.u32 %s3453_s23, 4  ;;  %s33_s22 = int_to_ptr.vmem [resolvable:$true] %s32_s22  ;;  %s3510_s24 = int_to_ptr.vmem [resolvable:$true] %s20_s24 }
   0x5   :  { %s3308_s27 = scalar_lea.hbm %s3959_s1, 1280 }
   0x6   :  { %p3309_p0 = scmp.ne.s32.totalorder %s3959_s1, %s3308_s27  ;;  %p3312_p1 = scmp.lt.u32.totalorder %s3308_s27, %s3959_s1 }
   0x8   :  { %p3314_p2 = pnand %p3312_p1, %p3309_p0 }
   0xa   :  { %3317 = shalt.err (!%p3314_p2)
}
   0xb   :  { %s3318_s8 = scalar_lea.vmem %s33_s22, 1280  ;;  %p3323_p4 = scmp.lt.s32.totalorder %s33_s22, %s33_s22 }
   0xc   :  { %p3319_p3 = scmp.ne.s32.totalorder %s33_s22, %s3318_s8  ;;  %p3324_p5 = scmp.lt.s32.totalorder %s3318_s8, %s3318_s8 }
   0xe   :  { %p3325_p6 = por %p3324_p5, %p3323_p4 }
  0x10   :  { %p3326_p7 = pnand %p3325_p6, %p3319_p3 }
  0x12   :  { %3329 = shalt.err (!%p3326_p7)
}
  0x13   :  { %s3454_s9 = smov 128   ;;  %s3455_s10 = smov 8  }
  0x14   :  { %38 = dma.hbm_to_vmem [thread:$0]  %s3959_s1, 1280, %s33_s22, [#allocation9], %s3454_s9, %s3454_s9, %s3455_s10  }
  0x15   :  { %s3330_s15 = scalar_lea.hbm %s3958_s0, 256 }
  0x16   :  { %p3331_p8 = scmp.ne.s32.totalorder %s3958_s0, %s3330_s15  ;;  %p3334_p9 = scmp.lt.u32.totalorder %s3330_s15, %s3958_s0 }
  0x18   :  { %p3336_p10 = pnand %p3334_p9, %p3331_p8 }
  0x1a   :  { %3339 = shalt.err (!%p3336_p10)
}
  0x1b   :  { %s3340_s20 = scalar_lea.vmem %s3510_s24, 256  ;;  %p3345_p12 = scmp.lt.s32.totalorder %s3510_s24, %s3510_s24 }
  0x1c   :  { %p3341_p11 = scmp.ne.s32.totalorder %s3510_s24, %s3340_s20  ;;  %p3346_p13 = scmp.lt.s32.totalorder %s3340_s20, %s3340_s20 }
  0x1e   :  { %p3347_p0 = por %p3346_p13, %p3345_p12 }
  0x20   :  { %p3348_p1 = pnand %p3347_p0, %p3341_p11 }
  0x22   :  { %3351 = shalt.err (!%p3348_p1)
}
  0x23   :  { %26 = dma.hbm_to_vmem [thread:$0]  %s3958_s0, 256, %s3510_s24, [#allocation6], %s3454_s9, %s3454_s9, %s3455_s10  }
  0x24   :  { %s3456_s22 = smov [#allocation10]   ;;  %s3352_s27 = scalar_lea.hbm %s3960_s2, 4096 }
  0x25   :  { %s44_s23 = sshll.u32 %s3456_s22, 4  ;;  %p3353_p2 = scmp.ne.s32.totalorder %s3960_s2, %s3352_s27  ;;  %s45_s23 = int_to_ptr.vmem [resolvable:$true] %s44_s23 }
  0x26   :  { %p3356_p3 = scmp.lt.u32.totalorder %s3352_s27, %s3960_s2 }
  0x28   :  { %p3358_p4 = pnand %p3356_p3, %p3353_p2 }
  0x2a   :  { %3361 = shalt.err (!%p3358_p4)
}
  0x2b   :  { %s3362_s8 = scalar_lea.vmem %s45_s23, 4096  ;;  %p3367_p6 = scmp.lt.s32.totalorder %s45_s23, %s45_s23 }
  0x2c   :  { %p3363_p5 = scmp.ne.s32.totalorder %s45_s23, %s3362_s8  ;;  %p3368_p7 = scmp.lt.s32.totalorder %s3362_s8, %s3362_s8 }
  0x2e   :  { %p3369_p8 = por %p3368_p7, %p3367_p6 }
  0x30   :  { %p3370_p9 = pnand %p3369_p8, %p3363_p5 }
  0x32   :  { %3373 = shalt.err (!%p3370_p9)
}
  0x33   :  { %s3457_s0 = smov 256   ;;  %s3458_s24 = smov 16  }
  0x34   :  { %50 = dma.hbm_to_vmem [thread:$0]  %s3960_s2, 4096, %s45_s23, [#allocation9], %s3457_s0, %s3457_s0, %s3458_s24  }
  0x35   :  { %s3459_s12 = smov [#allocation11]   ;;  %s3374_s16 = scalar_lea.hbm %s3961_s3, 256 }
  0x36   :  { %s57_s13 = sshll.u32 %s3459_s12, 4  ;;  %p3375_p10 = scmp.ne.s32.totalorder %s3961_s3, %s3374_s16  ;;  %s58_s13 = int_to_ptr.vmem [resolvable:$true] %s57_s13 }
  0x37   :  { %p3378_p11 = scmp.lt.u32.totalorder %s3374_s16, %s3961_s3 }
  0x39   :  { %p3380_p12 = pnand %p3378_p11, %p3375_p10 }
  0x3b   :  { %3383 = shalt.err (!%p3380_p12)
}
  0x3c   :  { %s3384_s1 = scalar_lea.vmem %s58_s13, 256  ;;  %p3389_p0 = scmp.lt.s32.totalorder %s58_s13, %s58_s13 }
  0x3d   :  { %p3385_p13 = scmp.ne.s32.totalorder %s58_s13, %s3384_s1  ;;  %p3390_p1 = scmp.lt.s32.totalorder %s3384_s1, %s3384_s1 }
  0x3f   :  { %p3391_p2 = por %p3390_p1, %p3389_p0 }
  0x41   :  { %p3392_p3 = pnand %p3391_p2, %p3385_p13 }
  0x43   :  { %3395 = shalt.err (!%p3392_p3)
}
  0x44   :  { %60 = dma.hbm_to_vmem [thread:$0]  %s3961_s3, 256, %s58_s13, [#allocation12]  }
  0x45   :  { %3440 = dma.done.wait [#allocation6], 256  }
  0x46   :  { %3441 = vsyncadd [#allocation6], 4294967040 }
  0x47   :  { %3442 = dma.done.wait [#allocation9], 5376  }
  0x48   :  { %3443 = vsyncadd [#allocation9], 4294961920 }
  0x49   :  { %3444 = dma.done.wait [#allocation12], 256  }
  0x4a   :  { %3445 = vsyncadd [#allocation12], 4294967040  ;;  %s78_s22 = sld [smem:[#allocation0]]   ;;  %s3460_s23 = smov 2048   ;;  %v3965_v0 = vmov 0.0   ;;  %vm129_vm0 = vcmask 261120  }
  0x4b   :  { %90 = sst [smem:[#allocation15]] %s3460_s23  ;;  %3011 = vmatprep.subr.bf16.mxu0 %v3965_v0  ;;  %s3462_s25 = smov 64   ;;  %v3469_v33 = vmov 0   ;;  %vm3470_vm1 = vmmov 0   ;;  %vm3604_vm2 = vmpackc.low %vm129_vm0, %vm129_vm0  ;;  %vm566_vm3 = vcmask 130048   ;;  %vm1298_vm4 = vcmask 523264  }
  0x4c   :  { %92 = sst [smem:[#allocation15 + $0x1]] %s3460_s23  ;;  %s3463_s3 = smov 2   ;;  %3027 = vmatprep.mubr.msk.bf16.mxu0 %vm3470_vm1, %v3965_v0  ;;  %vm1301_vm5 = vcmask 785408  }
  0x4d   :  { %94 = sst [smem:[#allocation15 + $0x2]] %s3458_s24  ;;  %s3464_s26 = smov [#allocation2]  }
  0x4e   :  { %96 = sst [smem:[#allocation15 + $0x3]] %s3462_s25  ;;  %s86_s27 = sshll.u32 %s3464_s26, 4  ;;  %s87_s27 = int_to_ptr.vmem [resolvable:$true] %s86_s27 }
  0x4f   :  { %98 = sst [smem:[#allocation15 + $0x4]] %s3454_s9  ;;  %s3465_s29 = smov 1024  }
  0x50   :  { %100 = sst [smem:[#allocation15 + $0x5]] %s3463_s3  ;;  %s2694_s28 = sshll.u32 %s78_s22, 26 }
  0x51   :  { %102 = sst [smem:[#allocation15 + $0x6]] %s3465_s29  ;;  %s2695_s30 = sadd.s32 134217728, %s2694_s28 }
  0x52   :  { %104 = sst [smem:[#allocation15 + $0x7]] %s3462_s25  ;;  %s3466_s7 = smov 4  }
  0x53   :  { %106 = sst [smem:[#allocation15 + $0x8]] %s3466_s7  ;;  %s3467_s8 = smov [#allocation4]  }
  0x54   :  { %s3468_s0 = smov [#allocation14]   ;;  %s3472_s9 = smov 32  }
  0x55   :  { %108 = dma.general %s3962_s4, 16384, %s87_s27, %s3467_s8, %s3468_s0, [#allocation15], %s2695_s30, 0  }
  0x56   :  { %v121_v1 = vld [vmem:[#allocation8 + $0x20] sm:$0xff]  ;;  %v122_v2 = vld [vmem:[#allocation8 + $0x28] sm:$0xff]  ;;  %v123_v3 = vld [vmem:[#allocation8 + $0x30] sm:$0xff]  ;;  %s3471_s4 = smov 96   ;;  %s3473_s11 = smov [#allocation3]  }
  0x57   :  { %v3112_v4 = vpack.c.bf16 %v122_v2, %v121_v1  ;;  %v124_v5 = vld [vmem:[#allocation8 + $0x38] sm:$0xff]  ;;  %v125_v6 = vld [vmem:[#allocation5] sm:$0xff]  ;;  %v2722_v41 = vld [vmem:[#allocation8 + $0x40] ss:$0 sm:$0xff]  ;;  %s117_s12 = sshll.u32 %s3473_s11, 4  ;;  %s3396_s15 = scalar_lea.hbm %s3963_s5, 16384  ;;  %s118_s12 = int_to_ptr.vmem [resolvable:$true] %s117_s12 }
  0x58   :  { %v3116_v7 = vpack.c.bf16 %v124_v5, %v123_v3  ;;  %3008 = vmatprep.mubr.msk.f32.mxu1 %vm129_vm0, %v125_v6  ;;  %v3231_v8 = vld [vmem:[#allocation10 + $0x8] ss:$16 sps:$4 sm:$0xff]   ;;  %v3230_v9 = vld [vmem:[#allocation10 + $0x4] ss:$16 sps:$4 sm:$0xff]   ;;  %v3228_v12 = vld [vmem:[#allocation10] ss:$16 sps:$4 sm:$0xff]   ;;  %p3397_p4 = scmp.ne.s32.totalorder %s3963_s5, %s3396_s15  ;;  %p3400_p5 = scmp.lt.u32.totalorder %s3396_s15, %s3963_s5 }
  0x59   :  { %3113 = vmatprep.subr.bf16.mxu1 %v3112_v4  ;;  %3012 = vmatpush3.bf16.msra.mxu0 %v3231_v8  ;;  %v3235_v10 = vld [vmem:[#allocation10 + $0x28] ss:$16 sps:$4 sm:$0xff]   ;;  %v3234_v13 = vld [vmem:[#allocation10 + $0x24] ss:$16 sps:$4 sm:$0xff]   ;;  %v3232_v15 = vld [vmem:[#allocation10 + $0x20] ss:$16 sps:$4 sm:$0xff]  }
  0x5a   :  { %3115 = vmatpush3.bf16.msra.mxu1 %v3112_v4  ;;  %v126_v11 = vld [vmem:[#allocation5 + $0x8] sm:$0xff]  ;;  %3013 = vmatprep.subr.bf16.mxu0 %v3965_v0  ;;  %v3238_v16 = vld [vmem:[#allocation10 + $0x44] ss:$16 sps:$4 sm:$0xff]   ;;  %v3236_v18 = vld [vmem:[#allocation10 + $0x40] ss:$16 sps:$4 sm:$0xff]   ;;  %p3402_p6 = pnand %p3400_p5, %p3397_p4 }
  0x5b   :  { %3117 = vmatprep.subr.bf16.mxu1 %v3116_v7  ;;  %v3239_v14 = vld [vmem:[#allocation10 + $0x48] ss:$16 sps:$4 sm:$0xff]   ;;  %v3242_v19 = vld [vmem:[#allocation10 + $0x64] ss:$16 sps:$4 sm:$0xff]   ;;  %v3240_v20 = vld [vmem:[#allocation10 + $0x60] ss:$16 sps:$4 sm:$0xff]  }
  0x5c   :  { %v3243_v17 = vld [vmem:[#allocation10 + $0x68] ss:$16 sps:$4 sm:$0xff]   ;;  %v3246_v22 = vld [vmem:[#allocation10 + $0x84] ss:$16 sps:$4 sm:$0xff]   ;;  %v3244_v24 = vld [vmem:[#allocation10 + $0x80] ss:$16 sps:$4 sm:$0xff]  }
  0x5d   :  { %3014 = vmatpush3.bf16.msra.mxu0 %v3235_v10  ;;  %v3247_v21 = vld [vmem:[#allocation10 + $0x88] ss:$16 sps:$4 sm:$0xff]   ;;  %v3250_v25 = vld [vmem:[#allocation10 + $0xa4] ss:$16 sps:$4 sm:$0xff]   ;;  %v3248_v27 = vld [vmem:[#allocation10 + $0xa0] ss:$16 sps:$4 sm:$0xff]  }
  0x5e   :  { %3119 = vmatpush3.bf16.msra.mxu1 %v3116_v7  ;;  %3015 = vmatprep.subr.bf16.mxu0 %v3965_v0  ;;  %v3251_v23 = vld [vmem:[#allocation10 + $0xa8] ss:$16 sps:$4 sm:$0xff]   ;;  %v3254_v28 = vld [vmem:[#allocation10 + $0xc4] ss:$16 sps:$4 sm:$0xff]   ;;  %v3252_v29 = vld [vmem:[#allocation10 + $0xc0] ss:$16 sps:$4 sm:$0xff]  }
  0x5f   :  { %372 = vmatprep.subr.bf16.mxu1 %v3230_v9  ;;  %v3255_v26 = vld [vmem:[#allocation10 + $0xc8] ss:$16 sps:$4 sm:$0xff]   ;;  %v3258_v30 = vld [vmem:[#allocation10 + $0xe4] ss:$16 sps:$4 sm:$0xff]   ;;  %v3256_v31 = vld [vmem:[#allocation10 + $0xe0] ss:$16 sps:$4 sm:$0xff]  }
  0x60   :  { %v3259_v32 = vld [vmem:[#allocation10 + $0xe8] ss:$16 sps:$4 sm:$0xff]   ;;  %v127_v35 = vld [vmem:[#allocation8 + $0x10] sm:$0xff]  ;;  %v2724_v44 = vld [vmem:[#allocation8 + $0x42] ss:$0 sm:$0xff] }
  0x61   :  { %3009 = vmatmul.mubr.msk.f32.vlgmr.msra.gmra.mrb[0].mxu1 %vm129_vm0, %v126_v11  ;;  %3016 = vmatpush3.bf16.msra.mxu0 %v3239_v14  ;;  %v128_v34 = vld [vmem:[#allocation8 + $0x18] sm:$0xff]  ;;  %v2723_v47 = vld [vmem:[#allocation8 + $0x41] ss:$0 sm:$0xff]  ;;  %v3628_v7 = vld [vmem:[#allocation8 + $0x8] sm:$0xff] }
  0x62   :  { %373 = vmatpush1.bf16.msra.mxu1 %v3228_v12  ;;  %3017 = vmatprep.subr.bf16.mxu0 %v3965_v0  ;;  %v3626_v5 = vld [vmem:[#allocation8] sm:$0xff] }
  0x63   :  { %374 = vmatprep.subr.bf16.mxu1 %v3234_v13  ;;  %404 = vmatprep.mubr.bf16.mxu1 %v3469_v33 }
  0x65   :  { %3018 = vmatpush3.bf16.msra.mxu0 %v3243_v17 }
  0x66   :  { %375 = vmatpush1.bf16.msra.mxu1 %v3232_v15  ;;  %3019 = vmatprep.subr.bf16.mxu0 %v3965_v0 }
  0x67   :  { %376 = vmatprep.subr.bf16.mxu1 %v3238_v16 }
  0x69   :  { %3020 = vmatpush3.bf16.msra.mxu0 %v3247_v21 }
  0x6a   :  { %377 = vmatpush1.bf16.msra.mxu1 %v3236_v18  ;;  %3021 = vmatprep.subr.bf16.mxu0 %v3965_v0 }
  0x6b   :  { %378 = vmatprep.subr.bf16.mxu1 %v3242_v19 }
  0x6d   :  { %3022 = vmatpush3.bf16.msra.mxu0 %v3251_v23 }
  0x6e   :  { %379 = vmatpush1.bf16.msra.mxu1 %v3240_v20  ;;  %3023 = vmatprep.subr.bf16.mxu0 %v3965_v0 }
  0x6f   :  { %380 = vmatprep.subr.bf16.mxu1 %v3246_v22 }
  0x71   :  { %3024 = vmatpush3.bf16.msra.mxu0 %v3255_v26 }
  0x72   :  { %381 = vmatpush1.bf16.msra.mxu1 %v3244_v24  ;;  %3025 = vmatprep.subr.bf16.mxu0 %v3965_v0 }
  0x73   :  { %382 = vmatprep.subr.bf16.mxu1 %v3250_v25 }
  0x75   :  { %3026 = vmatpush3.bf16.msra.mxu0 %v3259_v32 }
  0x76   :  { %383 = vmatpush1.bf16.msra.mxu1 %v3248_v27 }
  0x77   :  { %384 = vmatprep.subr.bf16.mxu1 %v3254_v28 }
  0x7a   :  { %385 = vmatpush1.bf16.msra.mxu1 %v3252_v29 }
  0x7b   :  { %386 = vmatprep.subr.bf16.mxu1 %v3258_v30 }
  0x7e   :  { %387 = vmatpush1.bf16.msra.mxu1 %v3256_v31 }
 0x134   :  { %v3010_v36 = vpop.f32.mrb[0].mxu1 }
 0x135   :  { %v3590_v37 = vadd.f32 %v3010_v36, %v128_v34  ;;  %v202_v38 = vpop.f32.mrb[1].mxu1 }
 0x136   :  { %v3592_v39 = vadd.f32 %v202_v38, %v127_v35 }
 0x138   :  { %v211_v40 = vpack.c.bf16 %v3590_v37, %v3592_v39 }
 0x13a   :  { %405 = vmatmul.mubr.bf16.vlgmr.msra.gmra.mrb[4].mxu1 %v211_v40  ;;  %3028 = vmatmul.mubr.bf16.vlgmr.msra.gmra.mrb[0].mxu0 %v211_v40 }
 0x20d   :  { %v406_v42 = vpop.f32.mrb[4].mxu1  ;;  %v449_v43 = vpop.f32.mrb[0].mxu0 }
 0x20e   :  { %v3596_v45 = vadd.f32 %v2722_v41, %v406_v42  ;;  %v408_v46 = vpop.f32.mrb[5].mxu1  ;;  %v3029_v48 = vpop.f32.mrb[1].mxu0  ;;  %v475_v51 = vadd.f32 %v2724_v44, %v449_v43 }
 0x20f   :  { %v410_v49 = vpop.f32.mrb[6].mxu1  ;;  %v452_v50 = vpop.f32.mrb[2].mxu0  ;;  %v468_v55 = vadd.f32 %v2723_v47, %v408_v46 }
 0x210   :  { %v476_v52 = vadd.f32 %v2724_v44, %v452_v50  ;;  %v3030_v53 = vpop.f32.mrb[3].mxu0  ;;  %670 = vrot.lane.b32.xlu1 %v3596_v45, %s3471_s4  ;;  %v412_v54 = vpop.f32.mrb[7].mxu1  ;;  %3035 = vmatprep.mubr.msk.f32.mxu1 %vm129_vm0, %v3596_v45  ;;  %v3618_v62 = vadd.f32 %v2722_v41, %v410_v49 }
 0x211   :  { %v469_v56 = vadd.f32 %v2723_v47, %v412_v54 }
 0x212   :  { %v3126_v58 = vpack.c.bf16 %v476_v52, %v475_v51  ;;  %v3608_v59 = vpack.i.bf16 %v476_v52, %v475_v51 }
 0x213   :  { %v3610_v60 = vpack.i.bf16 %v469_v56, %v468_v55  ;;  %v3120_v61 = vpack.c.bf16 %v469_v56, %v468_v55 }
 0x215   :  { %3189 = vrot.lane.b32.xlu1 %v3610_v60, %s3462_s25  ;;  %3122 = vmatprep.subr.msk.bf16.mxu1 %vm3604_vm2, %v3120_v61 }
 0x216   :  { %3125 = vmatpush3.bf16.xpose.msk.msra.mxu1 %vm3604_vm2, %v3120_v61 }
 0x217   :  { %3127 = vmatprep.subr.bf16.mxu1 %v3126_v58 }
 0x21d   :  { %3036 = vmatmul.mubr.msk.f32.vlgmr.msra.gmra.mrb[2].mxu1 %vm129_vm0, %v3618_v62 }
 0x21e   :  { %3129 = vmatpush3.bf16.msra.mxu1 %v3126_v58 }
 0x282   :  { %v671_v63 = vpop.permute.xlu1 %670 }
 0x287   :  { %v3190_v1 = vpop.permute.xlu1 %3189 }
 0x288   :  { %v3192_v2 = vunpack.i.h.bf16 %v3190_v1  ;;  %v3191_v3 = vunpack.i.l.bf16 %v3190_v1 }
 0x28a   :  { %v3140_v4 = vpack.c.bf16 %v3192_v2, %v3191_v3 }
 0x28c   :  { %3142 = vmatprep.subr.msk.bf16.mxu0 %vm3604_vm2, %v3140_v4 }
 0x28d   :  { %3145 = vmatpush3.bf16.xpose.msk.msra.mxu0 %vm3604_vm2, %v3140_v4 }
 0x2f0   :  { %v3037_v6 = vpop.f32.mrb[2].mxu1 }
 0x2f1   :  { %v557_v8 = vpop.f32.mrb[3].mxu1  ;;  %v563_v10 = vadd.f32 %v3037_v6, %v3628_v7 }
 0x2f2   :  { %v558_v9 = vadd.f32 %v557_v8, %v3626_v5 }
 0x2f3   :  { %v570_v12 = vsel %vm566_vm3, %v563_v10, -inf }
 0x2f4   :  { %v567_v11 = vsel %vm566_vm3, %v558_v9, -inf }
 0x2f5   :  { %568 = vmax.xlane.f32.xlu0 %v567_v11 }
 0x2f9   :  { %571 = vmax.xlane.f32.xlu0 %v570_v12 }
 0x30f   :  { %3184 = vrot.lane.b32.xlu0 %v3610_v60, %s3471_s4 }
 0x313   :  { %872 = vrot.lane.b32.xlu0 %v3596_v45, %s3462_s25 }
 0x382   :  { %v569_v13 = vpop.xlane.xlu0 %568 }
 0x383   :  { %v573_v14 = vsub.f32 %v558_v9, %v569_v13 }
 0x385   :  { %v575_v17 = vmul.f32 1.442695, %v573_v14 }
 0x386   :  { %v572_v15 = vpop.xlane.xlu0 %571 }
 0x387   :  { %v574_v16 = vsub.f32 %v563_v10, %v572_v15 }
 0x389   :  { %v577_v18 = vmul.f32 1.442695, %v574_v16 }
 0x38a   :  { %v3185_v19 = vpop.permute.xlu0 %3184 }
 0x38b   :  { %3268 = vpow2.f32 %v577_v18  ;;  %v3187_v20 = vunpack.i.h.bf16 %v3185_v19  ;;  %v3186_v21 = vunpack.i.l.bf16 %v3185_v19 }
 0x38c   :  { %3270 = vpow2.f32 %v575_v17 }
 0x38d   :  { %v3130_v22 = vpack.c.bf16 %v3187_v20, %v3186_v21 }
 0x38e   :  { %v873_v23 = vpop.permute.xlu0 %872 }
 0x38f   :  { %3132 = vmatprep.subr.msk.bf16.mxu1 %vm3604_vm2, %v3130_v22  ;;  %3063 = vmatprep.mubr.msk.f32.mxu0 %vm129_vm0, %v873_v23 }
 0x395   :  { %v3269_v24 = vpop.eup %3268 }
 0x396   :  { %v582_v25 = vsel %vm566_vm3, %v3269_v24, 0.0  ;;  %v3271_v26 = vpop.eup %3270 }
 0x397   :  { %583 = vadd.xlane.f32.xlu1 %v582_v25  ;;  %v579_v27 = vsel %vm566_vm3, %v3271_v26, 0.0 }
 0x39b   :  { %580 = vadd.xlane.f32.xlu1 %v579_v27 }
 0x3ac   :  { %672 = vrot.lane.b32.xlu1 %v3618_v62, %s3471_s4 }
 0x3b0   :  { %874 = vrot.lane.b32.xlu1 %v3618_v62, %s3462_s25 }
 0x424   :  { %v584_v28 = vpop.xlane.xlu1 %583 }
 0x425   :  { %3272 = vrcp.f32 %v584_v28 }
 0x428   :  { %v581_v29 = vpop.xlane.xlu1 %580 }
 0x429   :  { %3274 = vrcp.f32 %v581_v29 }
 0x42c   :  { %v673_v30 = vpop.permute.xlu1 %672 }
 0x42f   :  { %v3273_v32 = vpop.eup %3272 }
 0x430   :  { %v875_v31 = vpop.permute.xlu1 %874  ;;  %v588_v36 = vmul.f32 %v3273_v32, %v3269_v24 }
 0x431   :  { %3064 = vmatmul.mubr.msk.f32.vlgmr.msra.gmra.mrb[4].mxu0 %vm129_vm0, %v875_v31 }
 0x433   :  { %v3275_v34 = vpop.eup %3274 }
 0x434   :  { %v587_v35 = vmul.f32 %v3275_v34, %v3271_v26 }
 0x436   :  { %3042 = vmatprep.mubr.msk.f32.mxu1 %vm566_vm3, %v587_v35 }
 0x437   :  { %3043 = vmatmul.mubr.msk.f32.vlgmr.msra.gmra.mrb[8].mxu1 %vm566_vm3, %v588_v36 }
 0x438   :  { %3135 = vmatpush3.bf16.xpose.msk.msra.mxu1 %vm3604_vm2, %v3130_v22  ;;  %3049 = vmatprep.mubr.msk.f32.mxu1 %vm129_vm0, %v671_v63 }
 0x43f   :  { %3050 = vmatmul.mubr.msk.f32.vlgmr.msra.gmra.mrb[10].mxu1 %vm129_vm0, %v673_v30 }
 0x504   :  { %v3065_v38 = vpop.f32.mrb[4].mxu0 }
 0x505   :  { %v954_v40 = vpop.f32.mrb[5].mxu0  ;;  %v960_v51 = vadd.f32 %v3065_v38, %v3628_v7 }
 0x506   :  { %v955_v49 = vadd.f32 %v954_v40, %v3626_v5 }
 0x507   :  { %v966_v53 = vsel %vm566_vm3, %v960_v51, -inf }
 0x508   :  { %v963_v52 = vsel %vm566_vm3, %v955_v49, -inf }
 0x50a   :  { %v3654_v41 = vpop.f32.mrb[8].mxu1 }
 0x50b   :  { %v3656_v42 = vpop.f32.mrb[9].mxu1 }
 0x512   :  { %v3051_v43 = vpop.f32.mrb[10].mxu1 }
 0x513   :  { %v758_v44 = vadd.f32 %v3051_v43, %v3628_v7  ;;  %v752_v46 = vpop.f32.mrb[11].mxu1 }
 0x514   :  { %v753_v47 = vadd.f32 %v752_v46, %v3626_v5 }
 0x515   :  { %v764_v48 = vsel %vm566_vm3, %v758_v44, -inf }
 0x516   :  { %765 = vmax.xlane.f32.xlu1 %v764_v48  ;;  %v761_v50 = vsel %vm566_vm3, %v753_v47, -inf }
 0x517   :  { %762 = vmax.xlane.f32.xlu0 %v761_v50 }
 0x51b   :  { %964 = vmax.xlane.f32.xlu0 %v963_v52 }
 0x51f   :  { %967 = vmax.xlane.f32.xlu0 %v966_v53 }
 0x5a3   :  { %v766_v56 = vpop.xlane.xlu1 %765 }
 0x5a4   :  { %v763_v54 = vpop.xlane.xlu0 %762  ;;  %v768_v63 = vsub.f32 %v758_v44, %v766_v56 }
 0x5a5   :  { %v767_v55 = vsub.f32 %v753_v47, %v763_v54 }
 0x5a6   :  { %v771_v6 = vmul.f32 1.442695, %v768_v63 }
 0x5a7   :  { %v769_v1 = vmul.f32 1.442695, %v767_v55 }
 0x5a8   :  { %v965_v58 = vpop.xlane.xlu0 %964 }
 0x5a9   :  { %v969_v61 = vsub.f32 %v955_v49, %v965_v58 }
 0x5ab   :  { %v971_v2 = vmul.f32 1.442695, %v969_v61 }
 0x5ac   :  { %v968_v3 = vpop.xlane.xlu0 %967 }
 0x5ad   :  { %3276 = vpow2.f32 %v971_v2  ;;  %v970_v4 = vsub.f32 %v960_v51, %v968_v3 }
 0x5ae   :  { %3278 = vpow2.f32 %v769_v1 }
 0x5af   :  { %v973_v8 = vmul.f32 1.442695, %v970_v4 }
 0x5b1   :  { %3280 = vpow2.f32 %v973_v8 }
 0x5b2   :  { %3282 = vpow2.f32 %v771_v6 }
 0x5b7   :  { %v3277_v9 = vpop.eup %3276 }
 0x5b8   :  { %v975_v10 = vsel %vm566_vm3, %v3277_v9, 0.0  ;;  %v3279_v11 = vpop.eup %3278 }
 0x5b9   :  { %976 = vadd.xlane.f32.xlu0 %v975_v10  ;;  %v773_v13 = vsel %vm566_vm3, %v3279_v11, 0.0 }
 0x5bb   :  { %v3281_v12 = vpop.eup %3280 }
 0x5bc   :  { %v978_v14 = vsel %vm566_vm3, %v3281_v12, 0.0  ;;  %v3283_v15 = vpop.eup %3282 }
 0x5bd   :  { %774 = vadd.xlane.f32.xlu0 %v773_v13  ;;  %979 = vadd.xlane.f32.xlu1 %v978_v14  ;;  %v776_v16 = vsel %vm566_vm3, %v3283_v15, 0.0 }
 0x5c1   :  { %777 = vadd.xlane.f32.xlu1 %v776_v16 }
 0x5d2   :  { %3199 = vrot.lane.b32.xlu1 %v3608_v59, %s3462_s25 }
 0x5d3   :  { %3194 = vrot.lane.b32.xlu0 %v3608_v59, %s3471_s4 }
 0x5d6   :  { %3204 = vrot.lane.b32.xlu1 %v3610_v60, %s3472_s9 }
 0x5d7   :  { %1074 = vrot.lane.b32.xlu0 %v3618_v62, %s3472_s9 }
 0x5da   :  { %1072 = vrot.lane.b32.xlu1 %v3596_v45, %s3472_s9 }
 0x646   :  { %v977_v17 = vpop.xlane.xlu0 %976 }
 0x64a   :  { %v980_v18 = vpop.xlane.xlu1 %979  ;;  %v775_v19 = vpop.xlane.xlu0 %774 }
 0x64b   :  { %3284 = vrcp.f32 %v775_v19  ;;  %v3262_v19 = vld [vmem:[#allocation10 + $0x4c] ss:$16 sps:$4 sm:$0xff]  }
 0x64c   :  { %3286 = vrcp.f32 %v977_v17  ;;  %v3260_v17 = vld [vmem:[#allocation10 + $0xc] ss:$16 sps:$4 sm:$0xff]  }
 0x64e   :  { %v778_v20 = vpop.xlane.xlu1 %777  ;;  %v3195_v21 = vpop.permute.xlu0 %3194 }
 0x64f   :  { %3288 = vrcp.f32 %v778_v20  ;;  %v3197_v22 = vunpack.i.h.bf16 %v3195_v21  ;;  %v3196_v23 = vunpack.i.l.bf16 %v3195_v21  ;;  %v3263_v20 = vld [vmem:[#allocation10 + $0x6c] ss:$16 sps:$4 sm:$0xff]  }
 0x650   :  { %3290 = vrcp.f32 %v980_v18  ;;  %v3261_v18 = vld [vmem:[#allocation10 + $0x2c] ss:$16 sps:$4 sm:$0xff]  }
 0x651   :  { %v3136_v24 = vpack.c.bf16 %v3197_v22, %v3196_v23  ;;  %v3264_v21 = vld [vmem:[#allocation10 + $0x8c] ss:$16 sps:$4 sm:$0xff]  }
 0x652   :  { %v3200_v25 = vpop.permute.xlu1 %3199  ;;  %v1075_v44 = vpop.permute.xlu0 %1074  ;;  %v3265_v22 = vld [vmem:[#allocation10 + $0xac] ss:$16 sps:$4 sm:$0xff]  }
 0x653   :  { %v3202_v60 = vunpack.i.h.bf16 %v3200_v25  ;;  %v3201_v26 = vunpack.i.l.bf16 %v3200_v25  ;;  %3137 = vmatprep.subr.bf16.mxu1 %v3136_v24  ;;  %v3266_v23 = vld [vmem:[#allocation10 + $0xcc] ss:$16 sps:$4 sm:$0xff]  }
 0x654   :  { %3139 = vmatpush3.bf16.msra.mxu1 %v3136_v24  ;;  %v3267_v24 = vld [vmem:[#allocation10 + $0xec] ss:$16 sps:$4 sm:$0xff]  }
 0x655   :  { %v3146_v62 = vpack.c.bf16 %v3202_v60, %v3201_v26  ;;  %v3285_v27 = vpop.eup %3284 }
 0x656   :  { %v3205_v45 = vpop.permute.xlu1 %3204  ;;  %v781_v28 = vmul.f32 %v3285_v27, %v3279_v11  ;;  %v3287_v29 = vpop.eup %3286 }
 0x657   :  { %3147 = vmatprep.subr.bf16.mxu1 %v3146_v62  ;;  %v3207_v30 = vunpack.i.h.bf16 %v3205_v45  ;;  %v3206_v31 = vunpack.i.l.bf16 %v3205_v45  ;;  %v983_v36 = vmul.f32 %v3287_v29, %v3277_v9 }
 0x658   :  { %3056 = vmatprep.mubr.msk.f32.mxu1 %vm566_vm3, %v781_v28 }
 0x659   :  { %v3289_v32 = vpop.eup %3288  ;;  %v3150_v38 = vpack.c.bf16 %v3207_v30, %v3206_v31 }
 0x65a   :  { %v782_v34 = vmul.f32 %v3289_v32, %v3283_v15  ;;  %v3291_v35 = vpop.eup %3290  ;;  %v1073_v43 = vpop.permute.xlu1 %1072 }
 0x65b   :  { %v984_v40 = vmul.f32 %v3291_v35, %v3281_v12 }
 0x65c   :  { %3057 = vmatmul.mubr.msk.f32.vlgmr.msra.gmra.mrb[12].mxu1 %vm566_vm3, %v782_v34 }
 0x65d   :  { %3149 = vmatpush3.bf16.msra.mxu1 %v3146_v62  ;;  %3070 = vmatprep.mubr.msk.f32.mxu1 %vm566_vm3, %v983_v36 }
 0x65e   :  { %3152 = vmatprep.subr.msk.bf16.mxu1 %vm3604_vm2, %v3150_v38 }
 0x660   :  { %3071 = vmatmul.mubr.msk.f32.vlgmr.msra.gmra.mrb[14].mxu1 %vm566_vm3, %v984_v40 }
 0x661   :  { %3077 = vmatprep.mubr.msk.f32.mxu1 %vm129_vm0, %v1073_v43 }
 0x666   :  { %3155 = vmatpush3.bf16.xpose.msk.msra.mxu1 %vm3604_vm2, %v3150_v38 }
 0x66d   :  { %3078 = vmatmul.mubr.msk.f32.vlgmr.msra.gmra.mrb[16].mxu1 %vm129_vm0, %v1075_v44 }
 0x72f   :  { %v3058_v46 = vpop.f32.mrb[12].mxu1 }
 0x730   :  { %v863_v47 = vpop.f32.mrb[13].mxu1 }
 0x731   :  { %v3213_v48 = vpack.i.bf16 %v3058_v46, %v863_v47  ;;  %v2749_v47 = vld [vmem:[#allocation8 + $0x43] ss:$0 sm:$0xff] }
 0x733   :  { %v3072_v49 = vpop.f32.mrb[14].mxu1 }
 0x734   :  { %v1063_v50 = vpop.f32.mrb[15].mxu1 }
 0x735   :  { %v3218_v51 = vpack.i.bf16 %v3072_v49, %v1063_v50 }
 0x740   :  { %v3079_v52 = vpop.f32.mrb[16].mxu1 }
 0x741   :  { %v1160_v53 = vadd.f32 %v3079_v52, %v3628_v7  ;;  %v1154_v54 = vpop.f32.mrb[17].mxu1 }
 0x742   :  { %v1155_v55 = vadd.f32 %v1154_v54, %v3626_v5 }
 0x743   :  { %v1166_v56 = vsel %vm566_vm3, %v1160_v53, -inf }
 0x744   :  { %1167 = vmax.xlane.f32.xlu0 %v1166_v56  ;;  %v1163_v57 = vsel %vm566_vm3, %v1155_v55, -inf }
 0x745   :  { %1164 = vmax.xlane.f32.xlu1 %v1163_v57 }
 0x756   :  { %3209 = vrot.lane.b32.xlu1 %v3608_v59, %s3472_s9 }
 0x75a   :  { %3219 = vrot.lane.b32.xlu1 %v3218_v51, %s3462_s25 }
 0x7d1   :  { %v1168_v58 = vpop.xlane.xlu0 %1167 }
 0x7d2   :  { %v1170_v61 = vsub.f32 %v1160_v53, %v1168_v58  ;;  %v1165_v63 = vpop.xlane.xlu1 %1164 }
 0x7d3   :  { %v1169_v1 = vsub.f32 %v1155_v55, %v1165_v63 }
 0x7d4   :  { %v1173_v2 = vmul.f32 1.442695, %v1170_v61 }
 0x7d5   :  { %v1171_v7 = vmul.f32 1.442695, %v1169_v1 }
 0x7d6   :  { %v3210_v3 = vpop.permute.xlu1 %3209 }
 0x7d7   :  { %3292 = vpow2.f32 %v1171_v7  ;;  %v3212_v5 = vunpack.i.h.bf16 %v3210_v3  ;;  %v3211_v4 = vunpack.i.l.bf16 %v3210_v3 }
 0x7d8   :  { %3294 = vpow2.f32 %v1173_v2 }
 0x7d9   :  { %v3156_v6 = vpack.c.bf16 %v3212_v5, %v3211_v4 }
 0x7da   :  { %v3220_v28 = vpop.permute.xlu1 %3219 }
 0x7db   :  { %3157 = vmatprep.subr.bf16.mxu0 %v3156_v6  ;;  %v3222_v31 = vunpack.i.h.bf16 %v3220_v28  ;;  %v3221_v32 = vunpack.i.l.bf16 %v3220_v28 }
 0x7dc   :  { %3159 = vmatpush3.bf16.msra.mxu0 %v3156_v6 }
 0x7dd   :  { %3087 = vmatprep.subr.bf16.mxu0 %v3965_v0 }
 0x7e1   :  { %v3293_v8 = vpop.eup %3292 }
 0x7e2   :  { %v1175_v59 = vsel %vm566_vm3, %v3293_v8, 0.0  ;;  %v3295_v9 = vpop.eup %3294 }
 0x7e3   :  { %1176 = vadd.xlane.f32.xlu0 %v1175_v59  ;;  %v1178_v10 = vsel %vm566_vm3, %v3295_v9, 0.0 }
 0x7e7   :  { %1179 = vadd.xlane.f32.xlu0 %v1178_v10 }
 0x7fd   :  { %3214 = vrot.lane.b32.xlu0 %v3213_v48, %s3472_s9 }
 0x870   :  { %v1177_v11 = vpop.xlane.xlu0 %1176 }
 0x871   :  { %3296 = vrcp.f32 %v1177_v11 }
 0x874   :  { %v1180_v12 = vpop.xlane.xlu0 %1179 }
 0x875   :  { %3298 = vrcp.f32 %v1180_v12 }
 0x878   :  { %v3215_v62 = vpop.permute.xlu0 %3214 }
 0x879   :  { %v3217_v27 = vunpack.i.h.bf16 %v3215_v62  ;;  %v3216_v45 = vunpack.i.l.bf16 %v3215_v62 }
 0x87b   :  { %v3297_v13 = vpop.eup %3296  ;;  %v1297_v29 = vsel %vm129_vm0, %v3654_v41, %v3217_v27  ;;  %v1296_v30 = vsel %vm129_vm0, %v3656_v42, %v3216_v45 }
 0x87c   :  { %v1183_v14 = vmul.f32 %v3297_v13, %v3293_v8  ;;  %v1299_v38 = vsel %vm1298_vm4, %v1296_v30, %v3221_v32  ;;  %v1300_v40 = vsel %vm1298_vm4, %v1297_v29, %v3222_v31 }
 0x87e   :  { %3084 = vmatprep.mubr.msk.f32.mxu0 %vm566_vm3, %v1183_v14 }
 0x87f   :  { %v3299_v15 = vpop.eup %3298 }
 0x880   :  { %v1184_v16 = vmul.f32 %v3299_v15, %v3295_v9 }
 0x882   :  { %3085 = vmatmul.mubr.msk.f32.vlgmr.msra.gmra.mrb[6].mxu0 %vm566_vm3, %v1184_v16 }
 0x883   :  { %3103 = vmatprep.mubr.msk.bf16.mxu0 %vm3470_vm1, %v3965_v0  ;;  %3088 = vmatpush3.bf16.msra.mxu0 %v3260_v17 }
 0x884   :  { %3089 = vmatprep.subr.bf16.mxu0 %v3965_v0 }
 0x887   :  { %3090 = vmatpush3.bf16.msra.mxu0 %v3261_v18 }
 0x888   :  { %3091 = vmatprep.subr.bf16.mxu0 %v3965_v0 }
 0x88b   :  { %3092 = vmatpush3.bf16.msra.mxu0 %v3262_v19 }
 0x88c   :  { %3093 = vmatprep.subr.bf16.mxu0 %v3965_v0 }
 0x88f   :  { %3094 = vmatpush3.bf16.msra.mxu0 %v3263_v20 }
 0x890   :  { %3095 = vmatprep.subr.bf16.mxu0 %v3965_v0 }
 0x893   :  { %3096 = vmatpush3.bf16.msra.mxu0 %v3264_v21 }
 0x894   :  { %3097 = vmatprep.subr.bf16.mxu0 %v3965_v0 }
 0x897   :  { %3098 = vmatpush3.bf16.msra.mxu0 %v3265_v22 }
 0x898   :  { %3099 = vmatprep.subr.bf16.mxu0 %v3965_v0 }
 0x89b   :  { %3100 = vmatpush3.bf16.msra.mxu0 %v3266_v23 }
 0x89c   :  { %3101 = vmatprep.subr.bf16.mxu0 %v3965_v0 }
 0x89f   :  { %3102 = vmatpush3.bf16.msra.mxu0 %v3267_v24 }
 0x955   :  { %v3086_v25 = vpop.f32.mrb[6].mxu0 }
 0x956   :  { %v1263_v60 = vpop.f32.mrb[7].mxu0 }
 0x957   :  { %v3223_v26 = vpack.i.bf16 %v3086_v25, %v1263_v60 }
 0x959   :  { %3224 = vrot.lane.b32.xlu1 %v3223_v26, %s3471_s4 }
 0x9cb   :  { %v3225_v34 = vpop.permute.xlu1 %3224 }
 0x9cc   :  { %v3227_v35 = vunpack.i.h.bf16 %v3225_v34  ;;  %v3226_v36 = vunpack.i.l.bf16 %v3225_v34 }
 0x9ce   :  { %v1303_v43 = vsel %vm1301_vm5, %v1300_v40, %v3227_v35  ;;  %v1302_v44 = vsel %vm1301_vm5, %v1299_v38, %v3226_v36 }
 0x9cf   :  { %v1304_v46 = vpack.c.bf16 %v1303_v43, %v1302_v44 }
 0x9d1   :  { %3104 = vmatmul.mubr.bf16.vlgmr.msra.gmra.mrb[8].mxu0 %v1304_v46 }
 0xaa4   :  { %v1408_v48 = vpop.f32.mrb[8].mxu0 }
 0xaa5   :  { %v1409_v49 = vadd.f32 %v2749_v47, %v1408_v48  ;;  %v3105_v41 = vpop.f32.mrb[9].mxu0 }
 0xaa6   :  { %v1411_v50 = vpop.f32.mrb[10].mxu0 }
 0xaa7   :  { %v1412_v51 = vadd.f32 %v2749_v47, %v1411_v50  ;;  %v3106_v42 = vpop.f32.mrb[11].mxu0  ;;  %v1415_v52 = vadd.f32 %v1409_v49, %v3592_v39 }
 0xaa9   :  { %1419 = vadd.xlane.f32.xlu1 %v1415_v52  ;;  %v1416_v53 = vadd.f32 %v1412_v51, %v3590_v37 }
 0xaab   :  { %1421 = vadd.xlane.f32.xlu0 %v1416_v53 }
 0xb36   :  { %v1420_v54 = vpop.xlane.xlu1 %1419 }
 0xb37   :  { %v1424_v55 = vmul.f32 0.0078125, %v1420_v54 }
 0xb38   :  { %v1422_v56 = vpop.xlane.xlu0 %1421 }
 0xb39   :  { %v1426_v57 = vsub.f32 %v1415_v52, %v1424_v55  ;;  %v1425_v58 = vmul.f32 0.0078125, %v1422_v56 }
 0xb3b   :  { %v1427_v61 = vsub.f32 %v1416_v53, %v1425_v58  ;;  %v1428_v63 = vmul.f32 %v1426_v57, %v1426_v57 }
 0xb3d   :  { %1430 = vadd.xlane.f32.xlu0 %v1428_v63  ;;  %v1429_v1 = vmul.f32 %v1427_v61, %v1427_v61 }
 0xb41   :  { %1432 = vadd.xlane.f32.xlu0 %v1429_v1 }
 0xb42   :  { %3405 = shalt.err (!%p3402_p6)  }
 0xb43   :  { %s3406_s20 = scalar_lea.vmem %s118_s12, 16384  ;;  %p3411_p8 = scmp.lt.s32.totalorder %s118_s12, %s118_s12 }
 0xb44   :  { %p3407_p7 = scmp.ne.s32.totalorder %s118_s12, %s3406_s20  ;;  %p3412_p9 = scmp.lt.s32.totalorder %s3406_s20, %s3406_s20 }
 0xb46   :  { %p3413_p10 = por %p3412_p9, %p3411_p8 }
 0xb48   :  { %p3414_p11 = pnand %p3413_p10, %p3407_p7 }
 0xb4a   :  { %3417 = shalt.err (!%p3414_p11)  }
 0xb4b   :  { %120 = dma.hbm_to_vmem [thread:$0]  %s3963_s5, 16384, %s118_s12, [#allocation4 + $0x1]  ;;  %v2758_v6 = vld [vmem:[#allocation8 + $0x44] ss:$0 sm:$0xff]  ;;  %v2759_v59 = vld [vmem:[#allocation8 + $0x45] ss:$0 sm:$0xff] }
 0xbca   :  { %v1431_v37 = vpop.xlane.xlu0 %1430 }
 0xbcb   :  { %v1434_v39 = vmul.f32 0.0078125, %v1431_v37 }
 0xbcd   :  { %v1436_v2 = vadd.f32 1e-05, %v1434_v39 }
 0xbce   :  { %v1433_v7 = vpop.xlane.xlu0 %1432 }
 0xbcf   :  { %3300 = vrsqrt.f32 %v1436_v2  ;;  %v1435_v3 = vmul.f32 0.0078125, %v1433_v7 }
 0xbd1   :  { %v1437_v5 = vadd.f32 1e-05, %v1435_v3 }
 0xbd3   :  { %3302 = vrsqrt.f32 %v1437_v5 }
 0xbd9   :  { %v3301_v4 = vpop.eup %3300 }
 0xbda   :  { %v1440_v8 = vmul.f32 %v3301_v4, %v1426_v57 }
 0xbdc   :  { %v1446_v9 = vmul.f32 %v2758_v6, %v1440_v8 }
 0xbdd   :  { %v3303_v10 = vpop.eup %3302 }
 0xbde   :  { %v3731_v11 = vadd.f32 %v2759_v59, %v1446_v9  ;;  %v1441_v12 = vmul.f32 %v3303_v10, %v1427_v61 }
 0xbe0   :  { %v1447_v13 = vmul.f32 %v2758_v6, %v1441_v12 }
 0xbe2   :  { %v3733_v14 = vadd.f32 %v2759_v59, %v1447_v13 }
 0xbe3   :  { %3446 = dma.done.wait [#allocation4], 16384 }
 0xbe4   :  { %3447 = vsyncadd [#allocation4], 4294950912  ;;  %1703 = vmatprep.mubr.bf16.mxu1 %v3469_v33  ;;  %1746 = vmatprep.mubr.bf16.mxu0 %v3469_v33  ;;  %v1460_v15 = vld [vmem:[#allocation2 + $0x8] sm:$0xff]  ;;  %v1462_v16 = vld [vmem:[#allocation2 + $0x18] sm:$0xff]  ;;  %v3739_v51 = vpack.c.bf16 %v3733_v14, %v3731_v11 }
 0xbe5   :  { %v1459_v17 = vld [vmem:[#allocation2] sm:$0xff]  ;;  %1671 = vmatprep.subr.bf16.mxu1 %v1460_v15  ;;  %1714 = vmatprep.subr.bf16.mxu0 %v1462_v16  ;;  %v1461_v18 = vld [vmem:[#allocation2 + $0x10] sm:$0xff]  ;;  %v1476_v19 = vld [vmem:[#allocation2 + $0x88] sm:$0xff] }
 0xbe6   :  { %v1478_v20 = vld [vmem:[#allocation2 + $0x98] sm:$0xff]  ;;  %1672 = vmatpush1.bf16.msra.mxu1 %v1459_v17  ;;  %1715 = vmatpush1.bf16.msra.mxu0 %v1461_v18  ;;  %v1475_v21 = vld [vmem:[#allocation2 + $0x80] sm:$0xff]  ;;  %v1477_v22 = vld [vmem:[#allocation2 + $0x90] sm:$0xff] }
 0xbe7   :  { %1673 = vmatprep.subr.bf16.mxu1 %v1476_v19  ;;  %1716 = vmatprep.subr.bf16.mxu0 %v1478_v20  ;;  %v1492_v23 = vld [vmem:[#allocation2 + $0x108] sm:$0xff]  ;;  %v1494_v24 = vld [vmem:[#allocation2 + $0x118] sm:$0xff]  ;;  %v1491_v25 = vld [vmem:[#allocation2 + $0x100] sm:$0xff] }
 0xbe8   :  { %v1493_v60 = vld [vmem:[#allocation2 + $0x110] sm:$0xff]  ;;  %v1508_v26 = vld [vmem:[#allocation2 + $0x188] sm:$0xff]  ;;  %v1510_v62 = vld [vmem:[#allocation2 + $0x198] sm:$0xff] }
 0xbe9   :  { %v1507_v27 = vld [vmem:[#allocation2 + $0x180] sm:$0xff]  ;;  %v1509_v45 = vld [vmem:[#allocation2 + $0x190] sm:$0xff]  ;;  %v1524_v28 = vld [vmem:[#allocation2 + $0x208] sm:$0xff] }
 0xbea   :  { %1674 = vmatpush1.bf16.msra.mxu1 %v1475_v21  ;;  %1717 = vmatpush1.bf16.msra.mxu0 %v1477_v22  ;;  %v1526_v29 = vld [vmem:[#allocation2 + $0x218] sm:$0xff]  ;;  %v1523_v30 = vld [vmem:[#allocation2 + $0x200] sm:$0xff]  ;;  %v1525_v31 = vld [vmem:[#allocation2 + $0x210] sm:$0xff] }
 0xbeb   :  { %1675 = vmatprep.subr.bf16.mxu1 %v1492_v23  ;;  %1718 = vmatprep.subr.bf16.mxu0 %v1494_v24  ;;  %v1540_v32 = vld [vmem:[#allocation2 + $0x288] sm:$0xff]  ;;  %v1542_v34 = vld [vmem:[#allocation2 + $0x298] sm:$0xff]  ;;  %v1539_v35 = vld [vmem:[#allocation2 + $0x280] sm:$0xff] }
 0xbec   :  { %v1541_v36 = vld [vmem:[#allocation2 + $0x290] sm:$0xff]  ;;  %v1556_v38 = vld [vmem:[#allocation2 + $0x308] sm:$0xff]  ;;  %v1558_v40 = vld [vmem:[#allocation2 + $0x318] sm:$0xff] }
 0xbed   :  { %v1555_v43 = vld [vmem:[#allocation2 + $0x300] sm:$0xff]  ;;  %v1557_v44 = vld [vmem:[#allocation2 + $0x310] sm:$0xff]  ;;  %v1572_v46 = vld [vmem:[#allocation2 + $0x388] sm:$0xff] }
 0xbee   :  { %1676 = vmatpush1.bf16.msra.mxu1 %v1491_v25  ;;  %1719 = vmatpush1.bf16.msra.mxu0 %v1493_v60  ;;  %v1574_v47 = vld [vmem:[#allocation2 + $0x398] sm:$0xff]  ;;  %v1571_v48 = vld [vmem:[#allocation2 + $0x380] sm:$0xff]  ;;  %v1573_v49 = vld [vmem:[#allocation2 + $0x390] sm:$0xff] }
 0xbef   :  { %1677 = vmatprep.subr.bf16.mxu1 %v1508_v26  ;;  %1720 = vmatprep.subr.bf16.mxu0 %v1510_v62  ;;  %v1464_v41 = vld [vmem:[#allocation2 + $0x28] sm:$0xff]  ;;  %v1466_v50 = vld [vmem:[#allocation2 + $0x38] sm:$0xff]  ;;  %v1463_v42 = vld [vmem:[#allocation2 + $0x20] sm:$0xff] }
 0xbf0   :  { %v1465_v52 = vld [vmem:[#allocation2 + $0x30] sm:$0xff]  ;;  %v1480_v53 = vld [vmem:[#allocation2 + $0xa8] sm:$0xff]  ;;  %v1482_v54 = vld [vmem:[#allocation2 + $0xb8] sm:$0xff] }
 0xbf1   :  { %v1479_v55 = vld [vmem:[#allocation2 + $0xa0] sm:$0xff]  ;;  %v1481_v56 = vld [vmem:[#allocation2 + $0xb0] sm:$0xff]  ;;  %v1496_v57 = vld [vmem:[#allocation2 + $0x128] sm:$0xff] }
 0xbf2   :  { %1678 = vmatpush1.bf16.msra.mxu1 %v1507_v27  ;;  %1721 = vmatpush1.bf16.msra.mxu0 %v1509_v45  ;;  %v1498_v58 = vld [vmem:[#allocation2 + $0x138] sm:$0xff]  ;;  %v1495_v61 = vld [vmem:[#allocation2 + $0x120] sm:$0xff]  ;;  %v1497_v63 = vld [vmem:[#allocation2 + $0x130] sm:$0xff] }
 0xbf3   :  { %1679 = vmatprep.subr.bf16.mxu1 %v1524_v28  ;;  %1722 = vmatprep.subr.bf16.mxu0 %v1526_v29  ;;  %v1512_v1 = vld [vmem:[#allocation2 + $0x1a8] sm:$0xff]  ;;  %v1514_v37 = vld [vmem:[#allocation2 + $0x1b8] sm:$0xff]  ;;  %v1511_v39 = vld [vmem:[#allocation2 + $0x1a0] sm:$0xff] }
 0xbf4   :  { %v1513_v2 = vld [vmem:[#allocation2 + $0x1b0] sm:$0xff]  ;;  %v1528_v7 = vld [vmem:[#allocation2 + $0x228] sm:$0xff]  ;;  %v1530_v3 = vld [vmem:[#allocation2 + $0x238] sm:$0xff] }
 0xbf5   :  { %v1527_v5 = vld [vmem:[#allocation2 + $0x220] sm:$0xff]  ;;  %v1529_v4 = vld [vmem:[#allocation2 + $0x230] sm:$0xff]  ;;  %v1544_v6 = vld [vmem:[#allocation2 + $0x2a8] sm:$0xff] }
 0xbf6   :  { %1680 = vmatpush1.bf16.msra.mxu1 %v1523_v30  ;;  %1723 = vmatpush1.bf16.msra.mxu0 %v1525_v31  ;;  %v1546_v8 = vld [vmem:[#allocation2 + $0x2b8] sm:$0xff]  ;;  %v1543_v59 = vld [vmem:[#allocation2 + $0x2a0] sm:$0xff]  ;;  %v1545_v9 = vld [vmem:[#allocation2 + $0x2b0] sm:$0xff] }
 0xbf7   :  { %1681 = vmatprep.subr.bf16.mxu1 %v1540_v32  ;;  %1724 = vmatprep.subr.bf16.mxu0 %v1542_v34  ;;  %v1560_v10 = vld [vmem:[#allocation2 + $0x328] sm:$0xff]  ;;  %v1562_v12 = vld [vmem:[#allocation2 + $0x338] sm:$0xff]  ;;  %v1559_v13 = vld [vmem:[#allocation2 + $0x320] sm:$0xff] }
 0xbf8   :  { %v1561_v15 = vld [vmem:[#allocation2 + $0x330] sm:$0xff]  ;;  %v1576_v16 = vld [vmem:[#allocation2 + $0x3a8] sm:$0xff]  ;;  %v1578_v17 = vld [vmem:[#allocation2 + $0x3b8] sm:$0xff] }
 0xbf9   :  { %v1575_v18 = vld [vmem:[#allocation2 + $0x3a0] sm:$0xff]  ;;  %v1577_v19 = vld [vmem:[#allocation2 + $0x3b0] sm:$0xff]  ;;  %v1468_v20 = vld [vmem:[#allocation2 + $0x48] sm:$0xff] }
 0xbfa   :  { %1682 = vmatpush1.bf16.msra.mxu1 %v1539_v35  ;;  %1725 = vmatpush1.bf16.msra.mxu0 %v1541_v36  ;;  %v1470_v21 = vld [vmem:[#allocation2 + $0x58] sm:$0xff]  ;;  %v1467_v22 = vld [vmem:[#allocation2 + $0x40] sm:$0xff]  ;;  %v1469_v23 = vld [vmem:[#allocation2 + $0x50] sm:$0xff] }
 0xbfb   :  { %1683 = vmatprep.subr.bf16.mxu1 %v1556_v38  ;;  %1726 = vmatprep.subr.bf16.mxu0 %v1558_v40  ;;  %v1484_v24 = vld [vmem:[#allocation2 + $0xc8] sm:$0xff]  ;;  %v1486_v25 = vld [vmem:[#allocation2 + $0xd8] sm:$0xff]  ;;  %v1483_v60 = vld [vmem:[#allocation2 + $0xc0] sm:$0xff] }
 0xbfc   :  { %v1485_v26 = vld [vmem:[#allocation2 + $0xd0] sm:$0xff]  ;;  %v1500_v62 = vld [vmem:[#allocation2 + $0x148] sm:$0xff]  ;;  %v1502_v27 = vld [vmem:[#allocation2 + $0x158] sm:$0xff] }
 0xbfd   :  { %v1499_v45 = vld [vmem:[#allocation2 + $0x140] sm:$0xff]  ;;  %v1501_v28 = vld [vmem:[#allocation2 + $0x150] sm:$0xff]  ;;  %v1516_v29 = vld [vmem:[#allocation2 + $0x1c8] sm:$0xff] }
 0xbfe   :  { %1684 = vmatpush1.bf16.msra.mxu1 %v1555_v43  ;;  %1727 = vmatpush1.bf16.msra.mxu0 %v1557_v44  ;;  %v1518_v30 = vld [vmem:[#allocation2 + $0x1d8] sm:$0xff]  ;;  %v1515_v31 = vld [vmem:[#allocation2 + $0x1c0] sm:$0xff]  ;;  %v1517_v32 = vld [vmem:[#allocation2 + $0x1d0] sm:$0xff] }
 0xbff   :  { %1685 = vmatprep.subr.bf16.mxu1 %v1572_v46  ;;  %1728 = vmatprep.subr.bf16.mxu0 %v1574_v47  ;;  %v1532_v34 = vld [vmem:[#allocation2 + $0x248] sm:$0xff]  ;;  %v1534_v35 = vld [vmem:[#allocation2 + $0x258] sm:$0xff]  ;;  %v1531_v36 = vld [vmem:[#allocation2 + $0x240] sm:$0xff] }
 0xc00   :  { %v1533_v38 = vld [vmem:[#allocation2 + $0x250] sm:$0xff]  ;;  %v1548_v40 = vld [vmem:[#allocation2 + $0x2c8] sm:$0xff]  ;;  %v1550_v43 = vld [vmem:[#allocation2 + $0x2d8] sm:$0xff] }
 0xc01   :  { %v1547_v44 = vld [vmem:[#allocation2 + $0x2c0] sm:$0xff]  ;;  %v1549_v46 = vld [vmem:[#allocation2 + $0x2d0] sm:$0xff]  ;;  %v1564_v47 = vld [vmem:[#allocation2 + $0x348] sm:$0xff] }
 0xc02   :  { %1686 = vmatpush1.bf16.msra.mxu1 %v1571_v48  ;;  %1729 = vmatpush1.bf16.msra.mxu0 %v1573_v49  ;;  %v1566_v48 = vld [vmem:[#allocation2 + $0x358] sm:$0xff]  ;;  %v1563_v49 = vld [vmem:[#allocation2 + $0x340] sm:$0xff] }
 0xc03   :  { %1757 = vmatprep.subr.bf16.mxu1 %v1464_v41  ;;  %1800 = vmatprep.subr.bf16.mxu0 %v1466_v50  ;;  %v1565_v41 = vld [vmem:[#allocation2 + $0x350] sm:$0xff]  ;;  %v1580_v50 = vld [vmem:[#allocation2 + $0x3c8] sm:$0xff] }
 0xc05   :  { %1704 = vmatmul.mubr.bf16.vlgmr.msra.gmra.mrb[20].mxu1 %v3739_v51  ;;  %1747 = vmatmul.mubr.bf16.vlgmr.msra.gmra.mrb[12].mxu0 %v3739_v51 }
 0xc06   :  { %1758 = vmatpush1.bf16.msra.mxu1 %v1463_v42  ;;  %1801 = vmatpush1.bf16.msra.mxu0 %v1465_v52  ;;  %v1582_v42 = vld [vmem:[#allocation2 + $0x3d8] sm:$0xff]  ;;  %v1579_v52 = vld [vmem:[#allocation2 + $0x3c0] sm:$0xff] }
 0xc07   :  { %1759 = vmatprep.subr.bf16.mxu1 %v1480_v53  ;;  %1802 = vmatprep.subr.bf16.mxu0 %v1482_v54  ;;  %v1581_v53 = vld [vmem:[#allocation2 + $0x3d0] sm:$0xff]  ;;  %v1472_v54 = vld [vmem:[#allocation2 + $0x68] sm:$0xff] }
 0xc08   :  { %1789 = vmatprep.mubr.bf16.mxu1 %v3469_v33  ;;  %1832 = vmatprep.mubr.bf16.mxu0 %v3469_v33 }
 0xc0a   :  { %1760 = vmatpush1.bf16.msra.mxu1 %v1479_v55  ;;  %1803 = vmatpush1.bf16.msra.mxu0 %v1481_v56  ;;  %v1474_v55 = vld [vmem:[#allocation2 + $0x78] sm:$0xff]  ;;  %v1471_v56 = vld [vmem:[#allocation2 + $0x60] sm:$0xff] }
 0xc0b   :  { %1761 = vmatprep.subr.bf16.mxu1 %v1496_v57  ;;  %1804 = vmatprep.subr.bf16.mxu0 %v1498_v58  ;;  %v1473_v57 = vld [vmem:[#allocation2 + $0x70] sm:$0xff]  ;;  %v1488_v58 = vld [vmem:[#allocation2 + $0xe8] sm:$0xff] }
 0xc0e   :  { %1762 = vmatpush1.bf16.msra.mxu1 %v1495_v61  ;;  %1805 = vmatpush1.bf16.msra.mxu0 %v1497_v63  ;;  %v1490_v61 = vld [vmem:[#allocation2 + $0xf8] sm:$0xff]  ;;  %v1487_v63 = vld [vmem:[#allocation2 + $0xe0] sm:$0xff] }
 0xc0f   :  { %1763 = vmatprep.subr.bf16.mxu1 %v1512_v1  ;;  %1806 = vmatprep.subr.bf16.mxu0 %v1514_v37  ;;  %v1489_v1 = vld [vmem:[#allocation2 + $0xf0] sm:$0xff]  ;;  %v1504_v37 = vld [vmem:[#allocation2 + $0x168] sm:$0xff] }
 0xc12   :  { %1764 = vmatpush1.bf16.msra.mxu1 %v1511_v39  ;;  %1807 = vmatpush1.bf16.msra.mxu0 %v1513_v2  ;;  %v1506_v39 = vld [vmem:[#allocation2 + $0x178] sm:$0xff]  ;;  %v1503_v2 = vld [vmem:[#allocation2 + $0x160] sm:$0xff] }
 0xc13   :  { %1765 = vmatprep.subr.bf16.mxu1 %v1528_v7  ;;  %1808 = vmatprep.subr.bf16.mxu0 %v1530_v3  ;;  %v1505_v7 = vld [vmem:[#allocation2 + $0x170] sm:$0xff]  ;;  %v1520_v3 = vld [vmem:[#allocation2 + $0x1e8] sm:$0xff] }
 0xc16   :  { %1766 = vmatpush1.bf16.msra.mxu1 %v1527_v5  ;;  %1809 = vmatpush1.bf16.msra.mxu0 %v1529_v4  ;;  %v1522_v5 = vld [vmem:[#allocation2 + $0x1f8] sm:$0xff]  ;;  %v1519_v4 = vld [vmem:[#allocation2 + $0x1e0] sm:$0xff] }
 0xc17   :  { %1767 = vmatprep.subr.bf16.mxu1 %v1544_v6  ;;  %1810 = vmatprep.subr.bf16.mxu0 %v1546_v8  ;;  %v1521_v6 = vld [vmem:[#allocation2 + $0x1f0] sm:$0xff]  ;;  %v1536_v8 = vld [vmem:[#allocation2 + $0x268] sm:$0xff] }
 0xc1a   :  { %1768 = vmatpush1.bf16.msra.mxu1 %v1543_v59  ;;  %1811 = vmatpush1.bf16.msra.mxu0 %v1545_v9  ;;  %v1538_v59 = vld [vmem:[#allocation2 + $0x278] sm:$0xff]  ;;  %v1537_v9 = vld [vmem:[#allocation2 + $0x270] sm:$0xff] }
 0xc1b   :  { %1769 = vmatprep.subr.bf16.mxu1 %v1560_v10  ;;  %1812 = vmatprep.subr.bf16.mxu0 %v1562_v12  ;;  %v1552_v10 = vld [vmem:[#allocation2 + $0x2e8] sm:$0xff]  ;;  %v1554_v12 = vld [vmem:[#allocation2 + $0x2f8] sm:$0xff] }
 0xc1e   :  { %1770 = vmatpush1.bf16.msra.mxu1 %v1559_v13  ;;  %1813 = vmatpush1.bf16.msra.mxu0 %v1561_v15  ;;  %v1551_v13 = vld [vmem:[#allocation2 + $0x2e0] sm:$0xff]  ;;  %v1553_v15 = vld [vmem:[#allocation2 + $0x2f0] sm:$0xff] }
 0xc1f   :  { %1771 = vmatprep.subr.bf16.mxu1 %v1576_v16  ;;  %1814 = vmatprep.subr.bf16.mxu0 %v1578_v17  ;;  %v1568_v16 = vld [vmem:[#allocation2 + $0x368] sm:$0xff]  ;;  %v1570_v17 = vld [vmem:[#allocation2 + $0x378] sm:$0xff] }
 0xc22   :  { %1772 = vmatpush1.bf16.msra.mxu1 %v1575_v18  ;;  %1815 = vmatpush1.bf16.msra.mxu0 %v1577_v19  ;;  %v1567_v18 = vld [vmem:[#allocation2 + $0x360] sm:$0xff]  ;;  %v1569_v19 = vld [vmem:[#allocation2 + $0x370] sm:$0xff] }
 0xc23   :  { %1843 = vmatprep.subr.bf16.mxu1 %v1468_v20  ;;  %1886 = vmatprep.subr.bf16.mxu0 %v1470_v21  ;;  %v1584_v20 = vld [vmem:[#allocation2 + $0x3e8] sm:$0xff]  ;;  %v1586_v21 = vld [vmem:[#allocation2 + $0x3f8] sm:$0xff] }
 0xc25   :  { %1790 = vmatmul.mubr.bf16.vlgmr.msra.gmra.mrb[24].mxu1 %v3739_v51  ;;  %1833 = vmatmul.mubr.bf16.vlgmr.msra.gmra.mrb[16].mxu0 %v3739_v51 }
 0xc26   :  { %1844 = vmatpush1.bf16.msra.mxu1 %v1467_v22  ;;  %1887 = vmatpush1.bf16.msra.mxu0 %v1469_v23  ;;  %v1583_v22 = vld [vmem:[#allocation2 + $0x3e0] sm:$0xff]  ;;  %v1585_v23 = vld [vmem:[#allocation2 + $0x3f0] sm:$0xff] }
 0xc27   :  { %1845 = vmatprep.subr.bf16.mxu1 %v1484_v24  ;;  %1888 = vmatprep.subr.bf16.mxu0 %v1486_v25  ;;  %v1591_v24 = vlaneseq }
 0xc28   :  { %1875 = vmatprep.mubr.bf16.mxu1 %v3469_v33  ;;  %1918 = vmatprep.mubr.bf16.mxu0 %v3469_v33 }
 0xc29   :  { %v3755_v25 = vshrl.u32 %v1591_v24, 7 }
 0xc2a   :  { %1846 = vmatpush1.bf16.msra.mxu1 %v1483_v60  ;;  %1889 = vmatpush1.bf16.msra.mxu0 %v1485_v26 }
 0xc2b   :  { %1847 = vmatprep.subr.bf16.mxu1 %v1500_v62  ;;  %1890 = vmatprep.subr.bf16.mxu0 %v1502_v27  ;;  %v1593_v60 = vsub.s32 0, %v3755_v25  ;;  %v1601_v26 = vsub.s32 2, %v3755_v25  ;;  %v1587_v62 = vld [vmem:[#allocation11] sm:$0xff]  ;;  %v1597_v27 = vsub.s32 1, %v3755_v25 }
 0xc2e   :  { %1848 = vmatpush1.bf16.msra.mxu1 %v1499_v45  ;;  %1891 = vmatpush1.bf16.msra.mxu0 %v1501_v28  ;;  %v1605_v45 = vsub.s32 3, %v3755_v25  ;;  %v1594_v28 = vrot.slane %v1587_v62, %v1593_v60 }
 0xc2f   :  { %1849 = vmatprep.subr.bf16.mxu1 %v1516_v29  ;;  %1892 = vmatprep.subr.bf16.mxu0 %v1518_v30  ;;  %v1602_v29 = vrot.slane %v1587_v62, %v1601_v26 }
 0xc30   :  { %v1606_v30 = vrot.slane %v1587_v62, %v1605_v45 }
 0xc32   :  { %1850 = vmatpush1.bf16.msra.mxu1 %v1515_v31  ;;  %1893 = vmatpush1.bf16.msra.mxu0 %v1517_v32 }
 0xc33   :  { %1851 = vmatprep.subr.bf16.mxu1 %v1532_v34  ;;  %1894 = vmatprep.subr.bf16.mxu0 %v1534_v35 }
 0xc36   :  { %1852 = vmatpush1.bf16.msra.mxu1 %v1531_v36  ;;  %1895 = vmatpush1.bf16.msra.mxu0 %v1533_v38 }
 0xc37   :  { %1853 = vmatprep.subr.bf16.mxu1 %v1548_v40  ;;  %1896 = vmatprep.subr.bf16.mxu0 %v1550_v43 }
 0xc3a   :  { %1854 = vmatpush1.bf16.msra.mxu1 %v1547_v44  ;;  %1897 = vmatpush1.bf16.msra.mxu0 %v1549_v46 }
 0xc3b   :  { %1855 = vmatprep.subr.bf16.mxu1 %v1564_v47  ;;  %1898 = vmatprep.subr.bf16.mxu0 %v1566_v48 }
 0xc3e   :  { %1856 = vmatpush1.bf16.msra.mxu1 %v1563_v49  ;;  %1899 = vmatpush1.bf16.msra.mxu0 %v1565_v41 }
 0xc3f   :  { %1857 = vmatprep.subr.bf16.mxu1 %v1580_v50  ;;  %1900 = vmatprep.subr.bf16.mxu0 %v1582_v42 }
 0xc42   :  { %1858 = vmatpush1.bf16.msra.mxu1 %v1579_v52  ;;  %1901 = vmatpush1.bf16.msra.mxu0 %v1581_v53 }
 0xc43   :  { %1929 = vmatprep.subr.bf16.mxu1 %v1472_v54  ;;  %1972 = vmatprep.subr.bf16.mxu0 %v1474_v55 }
 0xc45   :  { %1876 = vmatmul.mubr.bf16.vlgmr.msra.gmra.mrb[28].mxu1 %v3739_v51  ;;  %1919 = vmatmul.mubr.bf16.vlgmr.msra.gmra.mrb[20].mxu0 %v3739_v51 }
 0xc46   :  { %1930 = vmatpush1.bf16.msra.mxu1 %v1471_v56  ;;  %1973 = vmatpush1.bf16.msra.mxu0 %v1473_v57 }
 0xc47   :  { %1931 = vmatprep.subr.bf16.mxu1 %v1488_v58  ;;  %1974 = vmatprep.subr.bf16.mxu0 %v1490_v61 }
 0xc48   :  { %1961 = vmatprep.mubr.bf16.mxu1 %v3469_v33  ;;  %2004 = vmatprep.mubr.bf16.mxu0 %v3469_v33  ;;  %v1535_v33 = vld [vmem:[#allocation2 + $0x260] sm:$0xff] }
 0xc4a   :  { %1932 = vmatpush1.bf16.msra.mxu1 %v1487_v63  ;;  %1975 = vmatpush1.bf16.msra.mxu0 %v1489_v1  ;;  %v1609_v63 = vsub.s32 4, %v3755_v25  ;;  %v1617_v1 = vsub.s32 6, %v3755_v25 }
 0xc4b   :  { %1933 = vmatprep.subr.bf16.mxu1 %v1504_v37  ;;  %1976 = vmatprep.subr.bf16.mxu0 %v1506_v39  ;;  %v1613_v37 = vsub.s32 5, %v3755_v25  ;;  %v1621_v39 = vsub.s32 7, %v3755_v25 }
 0xc4e   :  { %1934 = vmatpush1.bf16.msra.mxu1 %v1503_v2  ;;  %1977 = vmatpush1.bf16.msra.mxu0 %v1505_v7  ;;  %v1610_v2 = vrot.slane %v1587_v62, %v1609_v63  ;;  %v1618_v7 = vrot.slane %v1587_v62, %v1617_v1 }
 0xc4f   :  { %1935 = vmatprep.subr.bf16.mxu1 %v1520_v3  ;;  %1978 = vmatprep.subr.bf16.mxu0 %v1522_v5  ;;  %v1614_v3 = vrot.slane %v1587_v62, %v1613_v37  ;;  %v1622_v5 = vrot.slane %v1587_v62, %v1621_v39 }
 0xc52   :  { %1936 = vmatpush1.bf16.msra.mxu1 %v1519_v4  ;;  %1979 = vmatpush1.bf16.msra.mxu0 %v1521_v6 }
 0xc53   :  { %1937 = vmatprep.subr.bf16.mxu1 %v1536_v8  ;;  %1980 = vmatprep.subr.bf16.mxu0 %v1538_v59 }
 0xc56   :  { %1938 = vmatpush1.bf16.msra.mxu1 %v1535_v33  ;;  %1981 = vmatpush1.bf16.msra.mxu0 %v1537_v9 }
 0xc57   :  { %1939 = vmatprep.subr.bf16.mxu1 %v1552_v10  ;;  %1982 = vmatprep.subr.bf16.mxu0 %v1554_v12 }
 0xc5a   :  { %1940 = vmatpush1.bf16.msra.mxu1 %v1551_v13  ;;  %1983 = vmatpush1.bf16.msra.mxu0 %v1553_v15 }
 0xc5b   :  { %1941 = vmatprep.subr.bf16.mxu1 %v1568_v16  ;;  %1984 = vmatprep.subr.bf16.mxu0 %v1570_v17 }
 0xc5e   :  { %1942 = vmatpush1.bf16.msra.mxu1 %v1567_v18  ;;  %1985 = vmatpush1.bf16.msra.mxu0 %v1569_v19 }
 0xc5f   :  { %1943 = vmatprep.subr.bf16.mxu1 %v1584_v20  ;;  %1986 = vmatprep.subr.bf16.mxu0 %v1586_v21 }
 0xc62   :  { %1944 = vmatpush1.bf16.msra.mxu1 %v1583_v22  ;;  %1987 = vmatpush1.bf16.msra.mxu0 %v1585_v23 }
 0xc65   :  { %1962 = vmatmul.mubr.bf16.vlgmr.msra.gmra.mrb[32].mxu1 %v3739_v51  ;;  %2005 = vmatmul.mubr.bf16.vlgmr.msra.gmra.mrb[24].mxu0 %v3739_v51  ;;  %v1598_v51 = vrot.slane %v1587_v62, %v1597_v27 }
 0xcd8   :  { %v1705_v31 = vpop.f32.mrb[20].mxu1  ;;  %v1748_v32 = vpop.f32.mrb[12].mxu0 }
 0xcd9   :  { %v3769_v34 = vadd.f32 %v1705_v31, %v1594_v28  ;;  %v3771_v35 = vadd.f32 %v1748_v32, %v1602_v29  ;;  %v1707_v36 = vpop.f32.mrb[21].mxu1  ;;  %v1750_v38 = vpop.f32.mrb[13].mxu0  ;;  %v1588_v31 = vld [vmem:[#allocation11 + $0x8] sm:$0xff] }
 0xcda   :  { %v3773_v40 = vadd.f32 %v1707_v36, %v1598_v51  ;;  %v3775_v43 = vadd.f32 %v1750_v38, %v1606_v30  ;;  %v1709_v44 = vpop.f32.mrb[22].mxu1  ;;  %v1752_v46 = vpop.f32.mrb[14].mxu0  ;;  %v1626_v32 = vrot.slane %v1588_v31, %v1593_v60  ;;  %v1634_v36 = vrot.slane %v1588_v31, %v1601_v26 }
 0xcdb   :  { %v2015_v47 = vmax.f32 %v3769_v34, 0.0  ;;  %v2017_v48 = vmax.f32 %v3771_v35, 0.0  ;;  %v3779_v49 = vadd.f32 %v1709_v44, %v1594_v28  ;;  %v3781_v41 = vadd.f32 %v1752_v46, %v1602_v29  ;;  %v1711_v50 = vpop.f32.mrb[23].mxu1  ;;  %v1754_v42 = vpop.f32.mrb[15].mxu0 }
 0xcdc   :  { %v2016_v52 = vmax.f32 %v3773_v40, 0.0  ;;  %v2018_v53 = vmax.f32 %v3775_v43, 0.0  ;;  %v3785_v54 = vadd.f32 %v1711_v50, %v1598_v51  ;;  %v3787_v55 = vadd.f32 %v1754_v42, %v1606_v30 }
 0xcdd   :  { %v2031_v56 = vmax.f32 %v3779_v49, 0.0  ;;  %v2033_v57 = vmax.f32 %v3781_v41, 0.0  ;;  %v1630_v38 = vrot.slane %v1588_v31, %v1597_v27  ;;  %v1638_v44 = vrot.slane %v1588_v31, %v1605_v45 }
 0xcde   :  { %v2032_v58 = vmax.f32 %v3785_v54, 0.0  ;;  %v2034_v61 = vmax.f32 %v3787_v55, 0.0 }
 0xcf8   :  { %v1791_v4 = vpop.f32.mrb[24].mxu1  ;;  %v1834_v6 = vpop.f32.mrb[16].mxu0 }
 0xcf9   :  { %v3797_v8 = vadd.f32 %v1791_v4, %v1610_v2  ;;  %v3799_v59 = vadd.f32 %v1834_v6, %v1618_v7  ;;  %v1793_v33 = vpop.f32.mrb[25].mxu1  ;;  %v1836_v9 = vpop.f32.mrb[17].mxu0 }
 0xcfa   :  { %v3801_v10 = vadd.f32 %v1793_v33, %v1614_v3  ;;  %v3803_v12 = vadd.f32 %v1836_v9, %v1622_v5  ;;  %v1795_v13 = vpop.f32.mrb[26].mxu1  ;;  %v1838_v15 = vpop.f32.mrb[18].mxu0 }
 0xcfb   :  { %v2019_v16 = vmax.f32 %v3797_v8, 0.0  ;;  %v2021_v17 = vmax.f32 %v3799_v59, 0.0  ;;  %v3807_v18 = vadd.f32 %v1795_v13, %v1610_v2  ;;  %v3809_v19 = vadd.f32 %v1838_v15, %v1618_v7  ;;  %v1797_v20 = vpop.f32.mrb[27].mxu1  ;;  %v1840_v21 = vpop.f32.mrb[19].mxu0 }
 0xcfc   :  { %v2020_v22 = vmax.f32 %v3801_v10, 0.0  ;;  %v2022_v23 = vmax.f32 %v3803_v12, 0.0  ;;  %v3813_v24 = vadd.f32 %v1797_v20, %v1614_v3  ;;  %v3815_v62 = vadd.f32 %v1840_v21, %v1622_v5 }
 0xcfd   :  { %v2035_v28 = vmax.f32 %v3807_v18, 0.0  ;;  %v2037_v29 = vmax.f32 %v3809_v19, 0.0 }
 0xcfe   :  { %v2036_v51 = vmax.f32 %v3813_v24, 0.0  ;;  %v2038_v30 = vmax.f32 %v3815_v62, 0.0 }
 0xd18   :  { %v1877_v46 = vpop.f32.mrb[28].mxu1  ;;  %v1920_v50 = vpop.f32.mrb[20].mxu0 }
 0xd19   :  { %v3829_v42 = vadd.f32 %v1877_v46, %v1626_v32  ;;  %v3831_v2 = vadd.f32 %v1920_v50, %v1634_v36  ;;  %v1879_v7 = vpop.f32.mrb[29].mxu1  ;;  %v1922_v3 = vpop.f32.mrb[21].mxu0 }
 0xd1a   :  { %v3833_v5 = vadd.f32 %v1879_v7, %v1630_v38  ;;  %v3835_v60 = vadd.f32 %v1922_v3, %v1638_v44  ;;  %v1881_v4 = vpop.f32.mrb[30].mxu1  ;;  %v1924_v26 = vpop.f32.mrb[22].mxu0  ;;  %v1650_v3 = vrot.slane %v1588_v31, %v1617_v1 }
 0xd1b   :  { %v3839_v25 = vadd.f32 %v1881_v4, %v1626_v32  ;;  %v3841_v45 = vadd.f32 %v1924_v26, %v1634_v36  ;;  %v1883_v33 = vpop.f32.mrb[31].mxu1  ;;  %v1926_v9 = vpop.f32.mrb[23].mxu0  ;;  %v1642_v36 = vrot.slane %v1588_v31, %v1609_v63  ;;  %v1646_v4 = vrot.slane %v1588_v31, %v1613_v37 }
 0xd1c   :  { %v2024_v13 = vmax.f32 %v3833_v5, 0.0  ;;  %v3845_v20 = vadd.f32 %v1883_v33, %v1630_v38  ;;  %v3847_v21 = vadd.f32 %v1926_v9, %v1638_v44  ;;  %v1654_v26 = vrot.slane %v1588_v31, %v1621_v39 }
 0xd38   :  { %v1963_v0 = vpop.f32.mrb[32].mxu1  ;;  %v2006_v27 = vpop.f32.mrb[24].mxu0 }
 0xd39   :  { %v3853_v6 = vadd.f32 %v1963_v0, %v1642_v36  ;;  %v3855_v38 = vadd.f32 %v2006_v27, %v1650_v3  ;;  %v1965_v44 = vpop.f32.mrb[33].mxu1  ;;  %v2008_v33 = vpop.f32.mrb[25].mxu0 }
 0xd3a   :  { %v3857_v9 = vadd.f32 %v1965_v44, %v1646_v4  ;;  %v3859_v46 = vadd.f32 %v2008_v33, %v1654_v26  ;;  %v1967_v50 = vpop.f32.mrb[34].mxu1  ;;  %v2010_v15 = vpop.f32.mrb[26].mxu0 }
 0xd3b   :  { %v3863_v1 = vadd.f32 %v1967_v50, %v1642_v36  ;;  %v3865_v37 = vadd.f32 %v2010_v15, %v1650_v3  ;;  %v1969_v0 = vpop.f32.mrb[35].mxu1  ;;  %v2012_v39 = vpop.f32.mrb[27].mxu0 }
 0xd3c   :  { %v2028_v31 = vmax.f32 %v3857_v9, 0.0  ;;  %v2030_v27 = vmax.f32 %v3859_v46, 0.0  ;;  %v3869_v44 = vadd.f32 %v1969_v0, %v1646_v4  ;;  %v3871_v33 = vadd.f32 %v2012_v39, %v1654_v26 }
 0xd3d   :  { %v2043_v7 = vmax.f32 %v3863_v1, 0.0 }
 0xd3e   :  { %v2044_v63 = vmax.f32 %v3869_v44, 0.0  ;;  %v2046_v50 = vmax.f32 %v3871_v33, 0.0 }
 0xd3f   :  { %3448 = dma.done.wait [#allocation4 + $0x1], 16384 }
 0xd40   :  { %3449 = vsyncadd [#allocation4 + $0x1], 4294950912  ;;  %v2052_v15 = vpack.c.bf16 %v2032_v58, %v2016_v52  ;;  %v2054_v36 = vpack.c.bf16 %v2034_v61, %v2018_v53  ;;  %v2075_v3 = vld [vmem:[#allocation3 + $0x40] sm:$0xff]  ;;  %v2076_v39 = vld [vmem:[#allocation3 + $0x48] sm:$0xff]  ;;  %v2056_v34 = vpack.c.bf16 %v2036_v51, %v2020_v22  ;;  %v2058_v35 = vpack.c.bf16 %v2038_v30, %v2022_v23  ;;  %s3474_s5 = smov [#allocation13]  }
 0xd41   :  { %v2091_v4 = vld [vmem:[#allocation3 + $0xc0] sm:$0xff]  ;;  %2822 = vmatprep.subr.bf16.mxu1 %v2075_v3  ;;  %v2092_v32 = vld [vmem:[#allocation3 + $0xc8] sm:$0xff]  ;;  %v2077_v43 = vld [vmem:[#allocation3 + $0x50] sm:$0xff]  ;;  %v3969_v8 = vmax.f32 %v3845_v20, 0.0  ;;  %v3971_v59 = vmax.f32 %v3847_v21, 0.0  ;;  %vm2589_vm6 = vcmask 1041409  }
 0xd42   :  { %2232 = vmatprep.mubr.bf16.mxu1 %v2052_v15  ;;  %2273 = vmatprep.mubr.bf16.mxu0 %v2054_v36  ;;  %v2067_v26 = vld [vmem:[#allocation3] sm:$0xff]  ;;  %v2068_v40 = vld [vmem:[#allocation3 + $0x8] sm:$0xff]  ;;  %v2093_v54 = vld [vmem:[#allocation3 + $0xd0] sm:$0xff]  ;;  %s2670_s21 = sshll.u32 %s3474_s5, 4  ;;  %vm2662_vm7 = vcmask 25600   ;;  %s2671_s21 = int_to_ptr.vmem [resolvable:$true] %s2670_s21 }
 0xd43   :  { %2844 = vmatprep.subr.bf16.mxu0 %v2091_v4  ;;  %v2083_v0 = vld [vmem:[#allocation3 + $0x80] sm:$0xff]  ;;  %2823 = vmatpush3.bf16.msra.mxu1 %v2067_v26  ;;  %v2084_v52 = vld [vmem:[#allocation3 + $0x88] sm:$0xff]  ;;  %v2069_v53 = vld [vmem:[#allocation3 + $0x10] sm:$0xff]  ;;  %s3418_s22 = scalar_lea.vmem %s2671_s21, 32  ;;  %p3423_p13 = scmp.lt.s32.totalorder %s2671_s21, %s2671_s21 }
 0xd44   :  { %2845 = vmatpush3.bf16.msra.mxu0 %v2083_v0  ;;  %2824 = vmatprep.subr.bf16.mxu1 %v2076_v39  ;;  %v2085_v55 = vld [vmem:[#allocation3 + $0x90] sm:$0xff]  ;;  %v2078_v58 = vld [vmem:[#allocation3 + $0x58] sm:$0xff]  ;;  %v2079_v3 = vld [vmem:[#allocation3 + $0x60] sm:$0xff]  ;;  %p3419_p12 = scmp.ne.s32.totalorder %s2671_s21, %s3418_s22  ;;  %p3424_p0 = scmp.lt.s32.totalorder %s3418_s22, %s3418_s22 }
 0xd45   :  { %2846 = vmatprep.subr.bf16.mxu0 %v2092_v32  ;;  %v2094_v61 = vld [vmem:[#allocation3 + $0xd8] sm:$0xff]  ;;  %v2095_v32 = vld [vmem:[#allocation3 + $0xe0] sm:$0xff]  ;;  %v2080_v0 = vld [vmem:[#allocation3 + $0x68] sm:$0xff] }
 0xd46   :  { %v2070_v15 = vld [vmem:[#allocation3 + $0x18] sm:$0xff]  ;;  %v2071_v4 = vld [vmem:[#allocation3 + $0x20] sm:$0xff]  ;;  %v2096_v39 = vld [vmem:[#allocation3 + $0xe8] sm:$0xff]  ;;  %p3425_p1 = por %p3424_p0, %p3423_p13 }
 0xd47   :  { %2825 = vmatpush3.bf16.msra.mxu1 %v2068_v40  ;;  %v2086_v36 = vld [vmem:[#allocation3 + $0x98] sm:$0xff]  ;;  %v2087_v26 = vld [vmem:[#allocation3 + $0xa0] sm:$0xff]  ;;  %v2072_v40 = vld [vmem:[#allocation3 + $0x28] sm:$0xff] }
 0xd48   :  { %2847 = vmatpush3.bf16.msra.mxu0 %v2084_v52  ;;  %2826 = vmatprep.subr.bf16.mxu1 %v2077_v43  ;;  %v2088_v52 = vld [vmem:[#allocation3 + $0xa8] sm:$0xff]  ;;  %v2081_v43 = vld [vmem:[#allocation3 + $0x70] sm:$0xff]  ;;  %v2110_v10 = vld [vmem:[#allocation3 + $0x158] sm:$0xff]  ;;  %p3426_p2 = pnand %p3425_p1, %p3419_p12 }
 0xd49   :  { %2848 = vmatprep.subr.bf16.mxu0 %v2093_v54  ;;  %v2097_v54 = vld [vmem:[#allocation3 + $0xf0] sm:$0xff]  ;;  %v2126_v12 = vld [vmem:[#allocation3 + $0x1d8] sm:$0xff]  ;;  %v2111_v24 = vld [vmem:[#allocation3 + $0x160] sm:$0xff] }
 0xd4a   :  { %v2109_v49 = vld [vmem:[#allocation3 + $0x150] sm:$0xff]  ;;  %v2102_v22 = vld [vmem:[#allocation3 + $0x118] sm:$0xff]  ;;  %v2127_v62 = vld [vmem:[#allocation3 + $0x1e0] sm:$0xff] }
 0xd4b   :  { %2827 = vmatpush3.bf16.msra.mxu1 %v2069_v53  ;;  %v2073_v53 = vld [vmem:[#allocation3 + $0x30] sm:$0xff]  ;;  %v2118_v23 = vld [vmem:[#allocation3 + $0x198] sm:$0xff]  ;;  %v2103_v51 = vld [vmem:[#allocation3 + $0x120] sm:$0xff] }
 0xd4c   :  { %2849 = vmatpush3.bf16.msra.mxu0 %v2085_v55  ;;  %2828 = vmatprep.subr.bf16.mxu1 %v2078_v58  ;;  %v2089_v55 = vld [vmem:[#allocation3 + $0xb0] sm:$0xff]  ;;  %v2082_v58 = vld [vmem:[#allocation3 + $0x78] sm:$0xff]  ;;  %v2119_v30 = vld [vmem:[#allocation3 + $0x1a0] sm:$0xff] }
 0xd4d   :  { %2850 = vmatprep.subr.bf16.mxu0 %v2094_v61  ;;  %v2098_v61 = vld [vmem:[#allocation3 + $0xf8] sm:$0xff]  ;;  %v2125_v41 = vld [vmem:[#allocation3 + $0x1d0] sm:$0xff]  ;;  %v2148_v19 = vld [vmem:[#allocation3 + $0x288] sm:$0xff] }
 0xd4e   :  { %v2133_v5 = vld [vmem:[#allocation3 + $0x210] sm:$0xff]  ;;  %v2158_v20 = vld [vmem:[#allocation3 + $0x2d8] sm:$0xff]  ;;  %v2175_v33 = vld [vmem:[#allocation3 + $0x360] sm:$0xff] }
 0xd4f   :  { %2829 = vmatpush3.bf16.msra.mxu1 %v2070_v15  ;;  %v2074_v15 = vld [vmem:[#allocation3 + $0x38] sm:$0xff]  ;;  %v2165_v46 = vld [vmem:[#allocation3 + $0x310] sm:$0xff] }
 0xd50   :  { %2851 = vmatpush3.bf16.msra.mxu0 %v2086_v36  ;;  %2830 = vmatprep.subr.bf16.mxu1 %v2079_v3  ;;  %v2090_v36 = vld [vmem:[#allocation3 + $0xb8] sm:$0xff]  ;;  %v2107_v3 = vld [vmem:[#allocation3 + $0x140] sm:$0xff]  ;;  %v2181_v9 = vld [vmem:[#allocation3 + $0x390] sm:$0xff] }
 0xd51   :  { %2852 = vmatprep.subr.bf16.mxu0 %v2095_v32  ;;  %v2123_v32 = vld [vmem:[#allocation3 + $0x1c0] sm:$0xff]  ;;  %v2134_v21 = vld [vmem:[#allocation3 + $0x218] sm:$0xff] }
 0xd52   :  { %v2182_v44 = vld [vmem:[#allocation3 + $0x398] sm:$0xff] }
 0xd53   :  { %2831 = vmatpush3.bf16.msra.mxu1 %v2071_v4  ;;  %v2051_v4 = vpack.c.bf16 %v2031_v56, %v2015_v47  ;;  %v2100_v47 = vld [vmem:[#allocation3 + $0x108] sm:$0xff]  ;;  %v2101_v56 = vld [vmem:[#allocation3 + $0x110] sm:$0xff] }
 0xd54   :  { %2853 = vmatpush3.bf16.msra.mxu0 %v2087_v26  ;;  %2832 = vmatprep.subr.bf16.mxu1 %v2080_v0  ;;  %v2053_v26 = vpack.c.bf16 %v2033_v57, %v2017_v48  ;;  %v2099_v0 = vld [vmem:[#allocation3 + $0x100] sm:$0xff]  ;;  %v2116_v48 = vld [vmem:[#allocation3 + $0x188] sm:$0xff]  ;;  %v2117_v57 = vld [vmem:[#allocation3 + $0x190] sm:$0xff] }
 0xd55   :  { %2854 = vmatprep.subr.bf16.mxu0 %v2096_v39  ;;  %v2115_v39 = vld [vmem:[#allocation3 + $0x180] sm:$0xff] }
 0xd57   :  { %2833 = vmatpush3.bf16.msra.mxu1 %v2072_v40  ;;  %v2108_v40 = vld [vmem:[#allocation3 + $0x148] sm:$0xff] }
 0xd58   :  { %2855 = vmatpush3.bf16.msra.mxu0 %v2088_v52  ;;  %2834 = vmatprep.subr.bf16.mxu1 %v2081_v43  ;;  %v2124_v52 = vld [vmem:[#allocation3 + $0x1c8] sm:$0xff] }
 0xd59   :  { %2856 = vmatprep.subr.bf16.mxu0 %v2097_v54  ;;  %v2112_v43 = vld [vmem:[#allocation3 + $0x168] sm:$0xff] }
 0xd5a   :  { %v2128_v54 = vld [vmem:[#allocation3 + $0x1e8] sm:$0xff] }
 0xd5b   :  { %2835 = vmatpush3.bf16.msra.mxu1 %v2073_v53  ;;  %v2104_v53 = vld [vmem:[#allocation3 + $0x128] sm:$0xff] }
 0xd5c   :  { %2857 = vmatpush3.bf16.msra.mxu0 %v2089_v55  ;;  %2836 = vmatprep.subr.bf16.mxu1 %v2082_v58  ;;  %v2120_v55 = vld [vmem:[#allocation3 + $0x1a8] sm:$0xff]  ;;  %v2113_v58 = vld [vmem:[#allocation3 + $0x170] sm:$0xff] }
 0xd5d   :  { %2858 = vmatprep.subr.bf16.mxu0 %v2098_v61  ;;  %v2129_v61 = vld [vmem:[#allocation3 + $0x1f0] sm:$0xff] }
 0xd5f   :  { %2837 = vmatpush3.bf16.msra.mxu1 %v2074_v15  ;;  %v2105_v15 = vld [vmem:[#allocation3 + $0x130] sm:$0xff] }
 0xd60   :  { %2859 = vmatpush3.bf16.msra.mxu0 %v2090_v36  ;;  %2866 = vmatprep.subr.bf16.mxu1 %v2107_v3  ;;  %v2121_v36 = vld [vmem:[#allocation3 + $0x1b0] sm:$0xff]  ;;  %v2114_v3 = vld [vmem:[#allocation3 + $0x178] sm:$0xff] }
 0xd61   :  { %2888 = vmatprep.subr.bf16.mxu0 %v2123_v32  ;;  %v2130_v32 = vld [vmem:[#allocation3 + $0x1f8] sm:$0xff] }
 0xd62   :  { %2233 = vmatmul.mubr.bf16.vlgmr.msra.gmra.mrb[36].mxu1 %v2051_v4  ;;  %v2106_v4 = vld [vmem:[#allocation3 + $0x138] sm:$0xff] }
 0xd63   :  { %2274 = vmatmul.mubr.bf16.vlgmr.msra.gmra.mrb[28].mxu0 %v2053_v26  ;;  %2867 = vmatpush3.bf16.msra.mxu1 %v2099_v0  ;;  %v2122_v26 = vld [vmem:[#allocation3 + $0x1b8] sm:$0xff]  ;;  %v2139_v0 = vld [vmem:[#allocation3 + $0x240] sm:$0xff] }
 0xd64   :  { %2889 = vmatpush3.bf16.msra.mxu0 %v2115_v39  ;;  %2868 = vmatprep.subr.bf16.mxu1 %v2108_v40  ;;  %v2155_v39 = vld [vmem:[#allocation3 + $0x2c0] sm:$0xff]  ;;  %v2055_v40 = vpack.c.bf16 %v2035_v28, %v2019_v16  ;;  %v3970_v16 = vmax.f32 %v3835_v60, 0.0  ;;  %v2141_v28 = vld [vmem:[#allocation3 + $0x250] sm:$0xff] }
 0xd65   :  { %2890 = vmatprep.subr.bf16.mxu0 %v2124_v52  ;;  %2314 = vmatprep.mubr.bf16.mxu1 %v2056_v34  ;;  %v2057_v52 = vpack.c.bf16 %v2037_v29, %v2021_v17  ;;  %v2131_v34 = vld [vmem:[#allocation3 + $0x200] sm:$0xff]  ;;  %v2132_v17 = vld [vmem:[#allocation3 + $0x208] sm:$0xff]  ;;  %v2157_v29 = vld [vmem:[#allocation3 + $0x2d0] sm:$0xff] }
 0xd66   :  { %2355 = vmatprep.mubr.bf16.mxu0 %v2058_v35  ;;  %v2147_v35 = vld [vmem:[#allocation3 + $0x280] sm:$0xff]  ;;  %v2062_v18 = vpack.c.bf16 %v3971_v59, %v3970_v16  ;;  %v2149_v60 = vld [vmem:[#allocation3 + $0x290] sm:$0xff]  ;;  %v2176_v16 = vld [vmem:[#allocation3 + $0x368] sm:$0xff] }
 0xd67   :  { %2869 = vmatpush3.bf16.msra.mxu1 %v2100_v47  ;;  %v2140_v47 = vld [vmem:[#allocation3 + $0x248] sm:$0xff] }
 0xd68   :  { %2891 = vmatpush3.bf16.msra.mxu0 %v2116_v48  ;;  %2870 = vmatprep.subr.bf16.mxu1 %v2109_v49  ;;  %v2156_v48 = vld [vmem:[#allocation3 + $0x2c8] sm:$0xff]  ;;  %v2060_v49 = vpack.c.bf16 %v3969_v8, %v2024_v13  ;;  %v2142_v13 = vld [vmem:[#allocation3 + $0x258] sm:$0xff]  ;;  %v2167_v8 = vld [vmem:[#allocation3 + $0x320] sm:$0xff] }
 0xd69   :  { %2892 = vmatprep.subr.bf16.mxu0 %v2125_v41  ;;  %v2150_v41 = vld [vmem:[#allocation3 + $0x298] sm:$0xff]  ;;  %v2192_v59 = vld [vmem:[#allocation3 + $0x3e8] sm:$0xff] }
 0xd6b   :  { %2871 = vmatpush3.bf16.msra.mxu1 %v2101_v56  ;;  %v2143_v56 = vld [vmem:[#allocation3 + $0x260] sm:$0xff] }
 0xd6c   :  { %2893 = vmatpush3.bf16.msra.mxu0 %v2117_v57  ;;  %2872 = vmatprep.subr.bf16.mxu1 %v2110_v10  ;;  %v2159_v57 = vld [vmem:[#allocation3 + $0x2e0] sm:$0xff] }
 0xd6d   :  { %2894 = vmatprep.subr.bf16.mxu0 %v2126_v12  ;;  %v2135_v10 = vld [vmem:[#allocation3 + $0x220] sm:$0xff] }
 0xd6e   :  { %v2151_v12 = vld [vmem:[#allocation3 + $0x2a0] sm:$0xff] }
 0xd6f   :  { %2873 = vmatpush3.bf16.msra.mxu1 %v2102_v22  ;;  %v2144_v22 = vld [vmem:[#allocation3 + $0x268] sm:$0xff] }
 0xd70   :  { %2895 = vmatpush3.bf16.msra.mxu0 %v2118_v23  ;;  %2874 = vmatprep.subr.bf16.mxu1 %v2111_v24  ;;  %v2160_v23 = vld [vmem:[#allocation3 + $0x2e8] sm:$0xff] }
 0xd71   :  { %2896 = vmatprep.subr.bf16.mxu0 %v2127_v62  ;;  %v2136_v24 = vld [vmem:[#allocation3 + $0x228] sm:$0xff] }
 0xd72   :  { %v2152_v62 = vld [vmem:[#allocation3 + $0x2a8] sm:$0xff] }
 0xd73   :  { %2875 = vmatpush3.bf16.msra.mxu1 %v2103_v51  ;;  %v2145_v51 = vld [vmem:[#allocation3 + $0x270] sm:$0xff] }
 0xd74   :  { %2897 = vmatpush3.bf16.msra.mxu0 %v2119_v30  ;;  %2876 = vmatprep.subr.bf16.mxu1 %v2112_v43  ;;  %v2161_v30 = vld [vmem:[#allocation3 + $0x2f0] sm:$0xff] }
 0xd75   :  { %2898 = vmatprep.subr.bf16.mxu0 %v2128_v54  ;;  %v2137_v43 = vld [vmem:[#allocation3 + $0x230] sm:$0xff] }
 0xd76   :  { %v2153_v54 = vld [vmem:[#allocation3 + $0x2b0] sm:$0xff] }
 0xd77   :  { %2877 = vmatpush3.bf16.msra.mxu1 %v2104_v53  ;;  %v2146_v53 = vld [vmem:[#allocation3 + $0x278] sm:$0xff] }
 0xd78   :  { %2899 = vmatpush3.bf16.msra.mxu0 %v2120_v55  ;;  %2878 = vmatprep.subr.bf16.mxu1 %v2113_v58  ;;  %v2162_v55 = vld [vmem:[#allocation3 + $0x2f8] sm:$0xff] }
 0xd79   :  { %2900 = vmatprep.subr.bf16.mxu0 %v2129_v61  ;;  %v2138_v58 = vld [vmem:[#allocation3 + $0x238] sm:$0xff] }
 0xd7a   :  { %v2154_v61 = vld [vmem:[#allocation3 + $0x2b8] sm:$0xff] }
 0xd7b   :  { %2879 = vmatpush3.bf16.msra.mxu1 %v2105_v15  ;;  %v2171_v15 = vld [vmem:[#allocation3 + $0x340] sm:$0xff] }
 0xd7c   :  { %2901 = vmatpush3.bf16.msra.mxu0 %v2121_v36  ;;  %2880 = vmatprep.subr.bf16.mxu1 %v2114_v3  ;;  %v2187_v36 = vld [vmem:[#allocation3 + $0x3c0] sm:$0xff]  ;;  %v3972_v3 = vmax.f32 %v3829_v42, 0.0  ;;  %v2064_v42 = vpack.c.bf16 %v2044_v63, %v2028_v31  ;;  %v2174_v63 = vld [vmem:[#allocation3 + $0x358] sm:$0xff] }
 0xd7d   :  { %2902 = vmatprep.subr.bf16.mxu0 %v2130_v32  ;;  %v3973_v32 = vmax.f32 %v3839_v25, 0.0  ;;  %v2164_v25 = vld [vmem:[#allocation3 + $0x308] sm:$0xff]  ;;  %v2190_v31 = vld [vmem:[#allocation3 + $0x3d8] sm:$0xff] }
 0xd7f   :  { %2881 = vmatpush3.bf16.msra.mxu1 %v2106_v4  ;;  %v2059_v4 = vpack.c.bf16 %v3973_v32, %v3972_v3 }
 0xd80   :  { %2903 = vmatpush3.bf16.msra.mxu0 %v2122_v26  ;;  %2910 = vmatprep.subr.bf16.mxu1 %v2139_v0  ;;  %v3974_v26 = vmax.f32 %v3831_v2, 0.0  ;;  %v3975_v0 = vmax.f32 %v3841_v45, 0.0  ;;  %v2066_v2 = vpack.c.bf16 %v2046_v50, %v2030_v27  ;;  %v2180_v45 = vld [vmem:[#allocation3 + $0x388] sm:$0xff]  ;;  %v2166_v27 = vld [vmem:[#allocation3 + $0x318] sm:$0xff]  ;;  %v2191_v50 = vld [vmem:[#allocation3 + $0x3e0] sm:$0xff] }
 0xd81   :  { %2932 = vmatprep.subr.bf16.mxu0 %v2155_v39 }
 0xd82   :  { %2315 = vmatmul.mubr.bf16.vlgmr.msra.gmra.mrb[40].mxu1 %v2055_v40  ;;  %v2061_v39 = vpack.c.bf16 %v3975_v0, %v3974_v26  ;;  %v2163_v40 = vld [vmem:[#allocation3 + $0x300] sm:$0xff] }
 0xd83   :  { %2356 = vmatmul.mubr.bf16.vlgmr.msra.gmra.mrb[32].mxu0 %v2057_v52  ;;  %2911 = vmatpush3.bf16.msra.mxu1 %v2131_v34  ;;  %v2179_v52 = vld [vmem:[#allocation3 + $0x380] sm:$0xff]  ;;  %v2172_v34 = vld [vmem:[#allocation3 + $0x348] sm:$0xff] }
 0xd84   :  { %2933 = vmatpush3.bf16.msra.mxu0 %v2147_v35  ;;  %2912 = vmatprep.subr.bf16.mxu1 %v2140_v47  ;;  %v2188_v35 = vld [vmem:[#allocation3 + $0x3c8] sm:$0xff]  ;;  %v2173_v47 = vld [vmem:[#allocation3 + $0x350] sm:$0xff] }
 0xd85   :  { %2934 = vmatprep.subr.bf16.mxu0 %v2156_v48  ;;  %2396 = vmatprep.mubr.bf16.mxu1 %v2060_v49  ;;  %v2189_v48 = vld [vmem:[#allocation3 + $0x3d0] sm:$0xff]  ;;  %v2183_v49 = vld [vmem:[#allocation3 + $0x3a0] sm:$0xff] }
 0xd86   :  { %2437 = vmatprep.mubr.bf16.mxu0 %v2062_v18  ;;  %v2168_v18 = vld [vmem:[#allocation3 + $0x328] sm:$0xff] }
 0xd87   :  { %2913 = vmatpush3.bf16.msra.mxu1 %v2132_v17  ;;  %v2184_v17 = vld [vmem:[#allocation3 + $0x3a8] sm:$0xff] }
 0xd88   :  { %2935 = vmatpush3.bf16.msra.mxu0 %v2148_v19  ;;  %2914 = vmatprep.subr.bf16.mxu1 %v2141_v28  ;;  %v2177_v19 = vld [vmem:[#allocation3 + $0x370] sm:$0xff] }
 0xd89   :  { %2936 = vmatprep.subr.bf16.mxu0 %v2157_v29  ;;  %v2193_v28 = vld [vmem:[#allocation3 + $0x3f0] sm:$0xff] }
 0xd8a   :  { %v2169_v29 = vld [vmem:[#allocation3 + $0x330] sm:$0xff] }
 0xd8b   :  { %2915 = vmatpush3.bf16.msra.mxu1 %v2133_v5  ;;  %v2185_v5 = vld [vmem:[#allocation3 + $0x3b0] sm:$0xff] }
 0xd8c   :  { %2937 = vmatpush3.bf16.msra.mxu0 %v2149_v60  ;;  %2916 = vmatprep.subr.bf16.mxu1 %v2142_v13  ;;  %v2178_v60 = vld [vmem:[#allocation3 + $0x378] sm:$0xff] }
 0xd8d   :  { %2938 = vmatprep.subr.bf16.mxu0 %v2158_v20  ;;  %v2194_v13 = vld [vmem:[#allocation3 + $0x3f8] sm:$0xff] }
 0xd8e   :  { %v2170_v20 = vld [vmem:[#allocation3 + $0x338] sm:$0xff] }
 0xd8f   :  { %2917 = vmatpush3.bf16.msra.mxu1 %v2134_v21  ;;  %v2186_v21 = vld [vmem:[#allocation3 + $0x3b8] sm:$0xff] }
 0xd90   :  { %2939 = vmatpush3.bf16.msra.mxu0 %v2150_v41  ;;  %2918 = vmatprep.subr.bf16.mxu1 %v2143_v56  ;;  %v3976_v41 = vmax.f32 %v3853_v6, 0.0  ;;  %v2760_v6 = vld [vmem:[#allocation8 + $0x46] ss:$0 sm:$0xff] }
 0xd91   :  { %2940 = vmatprep.subr.bf16.mxu0 %v2159_v57  ;;  %v3977_v57 = vmax.f32 %v3855_v38, 0.0 }
 0xd92   :  { %v2063_v56 = vpack.c.bf16 %v2043_v7, %v3976_v41 }
 0xd93   :  { %2919 = vmatpush3.bf16.msra.mxu1 %v2135_v10  ;;  %v3978_v10 = vmax.f32 %v3865_v37, 0.0 }
 0xd94   :  { %2941 = vmatpush3.bf16.msra.mxu0 %v2151_v12  ;;  %2920 = vmatprep.subr.bf16.mxu1 %v2144_v22  ;;  %v3979_v22 = vmov 0.0  }
 0xd95   :  { %2942 = vmatprep.subr.bf16.mxu0 %v2160_v23  ;;  %v2065_v12 = vpack.c.bf16 %v3978_v10, %v3977_v57 }
 0xd97   :  { %2921 = vmatpush3.bf16.msra.mxu1 %v2136_v24 }
 0xd98   :  { %2943 = vmatpush3.bf16.msra.mxu0 %v2152_v62  ;;  %2922 = vmatprep.subr.bf16.mxu1 %v2145_v51 }
 0xd99   :  { %2944 = vmatprep.subr.bf16.mxu0 %v2161_v30 }
 0xd9b   :  { %2923 = vmatpush3.bf16.msra.mxu1 %v2137_v43 }
 0xd9c   :  { %2945 = vmatpush3.bf16.msra.mxu0 %v2153_v54  ;;  %2924 = vmatprep.subr.bf16.mxu1 %v2146_v53 }
 0xd9d   :  { %2946 = vmatprep.subr.bf16.mxu0 %v2162_v55 }
 0xd9f   :  { %2925 = vmatpush3.bf16.msra.mxu1 %v2138_v58 }
 0xda0   :  { %2947 = vmatpush3.bf16.msra.mxu0 %v2154_v61  ;;  %2954 = vmatprep.subr.bf16.mxu1 %v2171_v15 }
 0xda1   :  { %2976 = vmatprep.subr.bf16.mxu0 %v2187_v36 }
 0xda2   :  { %2397 = vmatmul.mubr.bf16.vlgmr.msra.gmra.mrb[44].mxu1 %v2059_v4 }
 0xda3   :  { %2438 = vmatmul.mubr.bf16.vlgmr.msra.gmra.mrb[36].mxu0 %v2061_v39  ;;  %2955 = vmatpush3.bf16.msra.mxu1 %v2163_v40 }
 0xda4   :  { %2977 = vmatpush3.bf16.msra.mxu0 %v2179_v52  ;;  %2956 = vmatprep.subr.bf16.mxu1 %v2172_v34 }
 0xda5   :  { %2978 = vmatprep.subr.bf16.mxu0 %v2188_v35  ;;  %2478 = vmatprep.mubr.bf16.mxu1 %v2064_v42 }
 0xda6   :  { %2519 = vmatprep.mubr.bf16.mxu0 %v2066_v2 }
 0xda7   :  { %2957 = vmatpush3.bf16.msra.mxu1 %v2164_v25 }
 0xda8   :  { %2979 = vmatpush3.bf16.msra.mxu0 %v2180_v45  ;;  %2958 = vmatprep.subr.bf16.mxu1 %v2173_v47 }
 0xda9   :  { %2980 = vmatprep.subr.bf16.mxu0 %v2189_v48 }
 0xdab   :  { %2959 = vmatpush3.bf16.msra.mxu1 %v2165_v46 }
 0xdac   :  { %2981 = vmatpush3.bf16.msra.mxu0 %v2181_v9  ;;  %2960 = vmatprep.subr.bf16.mxu1 %v2174_v63 }
 0xdad   :  { %2982 = vmatprep.subr.bf16.mxu0 %v2190_v31 }
 0xdaf   :  { %2961 = vmatpush3.bf16.msra.mxu1 %v2166_v27 }
 0xdb0   :  { %2983 = vmatpush3.bf16.msra.mxu0 %v2182_v44  ;;  %2962 = vmatprep.subr.bf16.mxu1 %v2175_v33 }
 0xdb1   :  { %2984 = vmatprep.subr.bf16.mxu0 %v2191_v50 }
 0xdb3   :  { %2963 = vmatpush3.bf16.msra.mxu1 %v2167_v8 }
 0xdb4   :  { %2985 = vmatpush3.bf16.msra.mxu0 %v2183_v49  ;;  %2964 = vmatprep.subr.bf16.mxu1 %v2176_v16 }
 0xdb5   :  { %2986 = vmatprep.subr.bf16.mxu0 %v2192_v59 }
 0xdb7   :  { %2965 = vmatpush3.bf16.msra.mxu1 %v2168_v18 }
 0xdb8   :  { %2987 = vmatpush3.bf16.msra.mxu0 %v2184_v17  ;;  %2966 = vmatprep.subr.bf16.mxu1 %v2177_v19 }
 0xdb9   :  { %2988 = vmatprep.subr.bf16.mxu0 %v2193_v28 }
 0xdbb   :  { %2967 = vmatpush3.bf16.msra.mxu1 %v2169_v29 }
 0xdbc   :  { %2989 = vmatpush3.bf16.msra.mxu0 %v2185_v5  ;;  %2968 = vmatprep.subr.bf16.mxu1 %v2178_v60 }
 0xdbd   :  { %2990 = vmatprep.subr.bf16.mxu0 %v2194_v13 }
 0xdbf   :  { %2969 = vmatpush3.bf16.msra.mxu1 %v2170_v20 }
 0xdc0   :  { %2991 = vmatpush3.bf16.msra.mxu0 %v2186_v21  ;;  %3107 = vmatprep.subr.mxu1 %v3979_v22 }
 0xdc2   :  { %2479 = vmatmul.mubr.bf16.vlgmr.msra.gmra.mrb[48].mxu1 %v2063_v56 }
 0xdc3   :  { %2520 = vmatmul.mubr.bf16.vlgmr.msra.gmra.mrb[40].mxu0 %v2065_v12  ;;  %3109 = vmatprep.mubr.msk.f32.mxu1 %vm3470_vm1, %v3979_v22 }
 0xe35   :  { %v2838_v23 = vpop.f32.mrb[36].mxu1 }
 0xe36   :  { %v2860_v24 = vpop.f32.mrb[28].mxu0  ;;  %v2839_v62 = vpop.f32.mrb[37].mxu1 }
 0xe37   :  { %v2861_v1 = vpop.f32.mrb[29].mxu0  ;;  %v2840_v7 = vadd.f32 %v2839_v62, %v2838_v23  ;;  %v2841_v38 = vpop.f32.mrb[38].mxu1 }
 0xe38   :  { %v2862_v51 = vadd.f32 %v2861_v1, %v2860_v24  ;;  %v2863_v30 = vpop.f32.mrb[30].mxu0  ;;  %v2842_v37 = vpop.f32.mrb[39].mxu1 }
 0xe39   :  { %v2864_v43 = vpop.f32.mrb[31].mxu0  ;;  %v2235_v54 = vadd.f32 %v2840_v7, %v2760_v6  ;;  %v2843_v53 = vadd.f32 %v2842_v37, %v2841_v38 }
 0xe3a   :  { %v2865_v55 = vadd.f32 %v2864_v43, %v2863_v30 }
 0xe3b   :  { %v2276_v58 = vadd.f32 %v2862_v51, %v2235_v54  ;;  %v2238_v61 = vadd.f32 %v2843_v53, %v2760_v6 }
 0xe3d   :  { %v2279_v15 = vadd.f32 %v2865_v55, %v2238_v61  ;;  %v2581_v55 = vld [vmem:[#allocation8 + $0x49] sm:$0xf] }
 0xe3e   :  { %3108 = vmatpush3.xpose.msra.mxu1 %v2581_v55 }
 0xe55   :  { %v2882_v36 = vpop.f32.mrb[40].mxu1 }
 0xe56   :  { %v2904_v3 = vpop.f32.mrb[32].mxu0  ;;  %v2883_v32 = vpop.f32.mrb[41].mxu1 }
 0xe57   :  { %v2905_v4 = vpop.f32.mrb[33].mxu0  ;;  %v2884_v26 = vadd.f32 %v2883_v32, %v2882_v36  ;;  %v2885_v39 = vpop.f32.mrb[42].mxu1  ;;  %v2761_v32 = vld [vmem:[#allocation8 + $0x47] ss:$0 sm:$0xff] }
 0xe58   :  { %v2906_v0 = vadd.f32 %v2905_v4, %v2904_v3  ;;  %v2907_v40 = vpop.f32.mrb[34].mxu0  ;;  %v2886_v52 = vpop.f32.mrb[43].mxu1 }
 0xe59   :  { %v2908_v34 = vpop.f32.mrb[35].mxu0  ;;  %v2317_v35 = vadd.f32 %v2884_v26, %v2276_v58  ;;  %v2887_v42 = vadd.f32 %v2886_v52, %v2885_v39  ;;  %v2762_v26 = vld [vmem:[#allocation8 + $0x48] ss:$0 sm:$0xff] }
 0xe5a   :  { %v2909_v2 = vadd.f32 %v2908_v34, %v2907_v40 }
 0xe5b   :  { %v2358_v25 = vadd.f32 %v2906_v0, %v2317_v35  ;;  %v2320_v45 = vadd.f32 %v2887_v42, %v2279_v15 }
 0xe5d   :  { %v2361_v47 = vadd.f32 %v2909_v2, %v2320_v45 }
 0xe75   :  { %v2926_v48 = vpop.f32.mrb[44].mxu1 }
 0xe76   :  { %v2948_v46 = vpop.f32.mrb[36].mxu0  ;;  %v2927_v9 = vpop.f32.mrb[45].mxu1 }
 0xe77   :  { %v2949_v63 = vpop.f32.mrb[37].mxu0  ;;  %v2928_v31 = vadd.f32 %v2927_v9, %v2926_v48  ;;  %v2929_v44 = vpop.f32.mrb[46].mxu1 }
 0xe78   :  { %v2950_v27 = vadd.f32 %v2949_v63, %v2948_v46  ;;  %v2951_v33 = vpop.f32.mrb[38].mxu0  ;;  %v2930_v50 = vpop.f32.mrb[47].mxu1 }
 0xe79   :  { %v2952_v8 = vpop.f32.mrb[39].mxu0  ;;  %v2399_v49 = vadd.f32 %v2928_v31, %v2358_v25  ;;  %v2931_v16 = vadd.f32 %v2930_v50, %v2929_v44 }
 0xe7a   :  { %v2953_v59 = vadd.f32 %v2952_v8, %v2951_v33 }
 0xe7b   :  { %v2440_v18 = vadd.f32 %v2950_v27, %v2399_v49  ;;  %v2402_v17 = vadd.f32 %v2931_v16, %v2361_v47  ;;  %v2763_v49 = vld [vmem:[#allocation8 + $0x4d] ss:$0 sm:$0xff] }
 0xe7d   :  { %v2443_v19 = vadd.f32 %v2953_v59, %v2402_v17 }
 0xe95   :  { %v2970_v28 = vpop.f32.mrb[48].mxu1 }
 0xe96   :  { %v2992_v29 = vpop.f32.mrb[40].mxu0  ;;  %v2971_v5 = vpop.f32.mrb[49].mxu1 }
 0xe97   :  { %v2993_v60 = vpop.f32.mrb[41].mxu0  ;;  %v2972_v13 = vadd.f32 %v2971_v5, %v2970_v28  ;;  %v2973_v21 = vpop.f32.mrb[50].mxu1 }
 0xe98   :  { %v2994_v20 = vadd.f32 %v2993_v60, %v2992_v29  ;;  %v2995_v41 = vpop.f32.mrb[42].mxu0  ;;  %v2974_v56 = vpop.f32.mrb[51].mxu1 }
 0xe99   :  { %v2996_v57 = vpop.f32.mrb[43].mxu0  ;;  %v2481_v10 = vadd.f32 %v2972_v13, %v2440_v18  ;;  %v2975_v12 = vadd.f32 %v2974_v56, %v2973_v21 }
 0xe9a   :  { %v2997_v22 = vadd.f32 %v2996_v57, %v2995_v41 }
 0xe9b   :  { %v2484_v23 = vadd.f32 %v2975_v12, %v2443_v19  ;;  %v2522_v24 = vadd.f32 %v2994_v20, %v2481_v10 }
 0xe9d   :  { %v2528_v6 = vadd.f32 %v2522_v24, %v3731_v11  ;;  %v2525_v62 = vadd.f32 %v2997_v22, %v2484_v23 }
 0xe9f   :  { %2532 = vadd.xlane.f32.xlu0 %v2528_v6  ;;  %v2529_v1 = vadd.f32 %v2525_v62, %v3733_v14 }
 0xea3   :  { %2534 = vadd.xlane.f32.xlu0 %v2529_v1 }
 0xf2c   :  { %v2533_v7 = vpop.xlane.xlu0 %2532 }
 0xf2d   :  { %v2536_v51 = vmul.f32 0.0078125, %v2533_v7 }
 0xf2f   :  { %v2538_v38 = vsub.f32 %v2528_v6, %v2536_v51 }
 0xf30   :  { %v2535_v30 = vpop.xlane.xlu0 %2534 }
 0xf31   :  { %v2537_v37 = vmul.f32 0.0078125, %v2535_v30  ;;  %v2540_v43 = vmul.f32 %v2538_v38, %v2538_v38 }
 0xf33   :  { %v2539_v54 = vsub.f32 %v2529_v1, %v2537_v37  ;;  %2542 = vadd.xlane.f32.xlu1 %v2540_v43 }
 0xf35   :  { %v2541_v53 = vmul.f32 %v2539_v54, %v2539_v54 }
 0xf37   :  { %2544 = vadd.xlane.f32.xlu1 %v2541_v53 }
 0xfc0   :  { %v2543_v58 = vpop.xlane.xlu1 %2542 }
 0xfc1   :  { %v2546_v61 = vmul.f32 0.0078125, %v2543_v58 }
 0xfc3   :  { %v2548_v11 = vadd.f32 1e-05, %v2546_v61 }
 0xfc4   :  { %v2545_v15 = vpop.xlane.xlu1 %2544 }
 0xfc5   :  { %3304 = vrsqrt.f32 %v2548_v11  ;;  %v2547_v36 = vmul.f32 0.0078125, %v2545_v15 }
 0xfc7   :  { %v2549_v14 = vadd.f32 1e-05, %v2547_v36 }
 0xfc9   :  { %3306 = vrsqrt.f32 %v2549_v14 }
 0xfcf   :  { %v3305_v3 = vpop.eup %3304 }
 0xfd0   :  { %v2552_v4 = vmul.f32 %v3305_v3, %v2538_v38 }
 0xfd2   :  { %v2558_v0 = vmul.f32 %v2761_v32, %v2552_v4 }
 0xfd3   :  { %v3307_v39 = vpop.eup %3306 }
 0xfd4   :  { %v2553_v40 = vmul.f32 %v3307_v39, %v2539_v54  ;;  %v2564_v52 = vadd.f32 %v2762_v26, %v2558_v0 }
 0xfd6   :  { %v2559_v34 = vmul.f32 %v2761_v32, %v2553_v40  ;;  %v2566_v35 = vrot.slane %v2564_v52, 4 }
 0xfd8   :  { %v2565_v42 = vadd.f32 %v2762_v26, %v2559_v34  ;;  %v2567_v2 = vadd.f32 %v2566_v35, %v2564_v52 }
 0xfda   :  { %v2568_v25 = vrot.slane %v2567_v2, 2  ;;  %v2572_v45 = vrot.slane %v2565_v42, 4 }
 0xfdc   :  { %v2569_v47 = vadd.f32 %v2568_v25, %v2567_v2  ;;  %v2573_v48 = vadd.f32 %v2572_v45, %v2565_v42 }
 0xfde   :  { %v2570_v46 = vrot.slane %v2569_v47, 1  ;;  %v2574_v9 = vrot.slane %v2573_v48, 2 }
 0xfe0   :  { %v2575_v63 = vadd.f32 %v2574_v9, %v2573_v48  ;;  %v2571_v31 = vadd.f32 %v2570_v46, %v2569_v47 }
 0xfe2   :  { %v2576_v27 = vrot.slane %v2575_v63, 1  ;;  %v2579_v33 = vmul.f32 0.125, %v2571_v31 }
 0xfe4   :  { %v2577_v44 = vadd.f32 %v2576_v27, %v2575_v63 }
 0xfe6   :  { %v2580_v50 = vmul.f32 0.125, %v2577_v44 }
 0xfe8   :  { %v2590_v8 = vsel %vm2589_vm6, %v2580_v50, %v2579_v33 }
 0xfe9   :  { %3110 = vmatmul.mubr.f32.vlgmr.msra.gmra.mrb[18].mxu1 %v2590_v8 }
0x10bc   :  { %v2658_v16 = vpop.f32.mrb[18].mxu1 }
0x10bd   :  { %v2659_v59 = vadd.f32 %v2763_v49, %v2658_v16  ;;  %v3111_v18 = vpop.f32.mrb[19].mxu1 }
0x10bf   :  { %2663 = vst.msk [vmem:[#allocation13] sm:$0x3] %vm2662_vm7, %v2659_v59 }
0x10c0   :  { %3429 = shalt.err (!%p3426_p2)
}
0x10c1   :  { %s3430_s3 = scalar_lea.hbm %s3964_s6, 32 }
0x10c2   :  { %p3431_p3 = scmp.ne.s32.totalorder %s3964_s6, %s3430_s3  ;;  %p3434_p4 = scmp.lt.u32.totalorder %s3430_s3, %s3964_s6 }
0x10c4   :  { %p3436_p5 = pnand %p3434_p4, %p3431_p3 }
0x10c6   :  { %3439 = shalt.err (!%p3436_p5)
}
0x10c7   :  { %2673 = dma.vmem_to_hbm [thread:$0]  %s2671_s21, 32, %s3964_s6, [#allocation7]  }
0x10c8   :  { %3450 = dma.done.wait [#allocation7], 32  }
0x10c9   :  { %3451 = vsyncadd [#allocation7], 4294967264 }
0x10ca   :  { %2677 = vsyncpa [#allocation6], 1 }
0x10cb   :  { %2678 = vsyncpa [#allocation9], 1 }
0x10cc   :  { %2679 = vsyncpa [#allocation12], 1 }
0x10cd   :  { %2680 = vsyncpa [#allocation7], 1 }
0x10ce   :  { %2681 = vsyncmov [#allocation4] }
0x10d1   :  { %s2682_s8 = vpop.sfrf %2681 }
0x10d2   :  { %p2764_p6 = scmp.ne.s32.totalorder %s2682_s8, 0 }
0x10d4   :  { %2686 = shalt.err (%p2764_p6)  }
0x10d5   :  { %2688 = vsyncmov [#allocation4 + $0x1] }
0x10d8   :  { %s2689_s0 = vpop.sfrf %2688 }
0x10d9   :  { %p2765_p7 = scmp.ne.s32.totalorder %s2689_s0, 0 }
0x10db   :  { %2693 = shalt.err (%p2765_p7)  }

</bundles_post_ra>
